<compile_context>
chip_gen: v5e
topology: v5e:2x2
jax: 0.10.0
libtpu: 0.0.40
codegen_flags: <defaults>
</compile_context>

<pallas_src>
import functools

import jax
import jax.numpy as jnp
from jax import lax
from jax.experimental import pallas as pl
from jax.experimental.pallas import tpu as pltpu


def vambc_fused_kernel(
    # ---- inputs ----
    x_ref,          # (B, T*Dx)    f32  input, timestep-blocked along lanes
    g_ref,          # (B, K)       f32  gumbel noise
    ewih_big_ref,   # (T*Dx, T*4H) f32  block-diag encoder input projection
    eb_big_ref,     # (1, T*4H)    f32  tiled encoder bias
    ewhh_ref,       # (H, 4H)      bf16 encoder recurrent weight
    wy_ref, by_ref,        # (H, K), (1, K)
    wzb_ref, bzb_ref,      # (H, Dz), (1, Dz)   zb_std / zb_mean pre-folded
    wc_ref, bc_ref,        # (K, Dz), (1, Dz)
    dwih_ref,       # (Dz, 4H)     f32  decoder input weight (step 0 only)
    db_ref,         # (1, 4H)      f32  decoder bias (b_ih + b_hh)
    dwf_ref,        # (H, 4H)      bf16 dec_whr @ (W_ih + W_hh)   (steps t>0)
    woutb_ref,      # (T*H, T*Dx)  f32  kron(I_T, dec_whr @ out_w)
    boutb_ref,      # (1, T*Dx)    f32  tiled output bias
    # ---- output ----
    out_ref,        # (R, C) f32 packed slab: [:2B, :T*Dx]=xc|xp, [:B, T*Dx:]=y,zb,z
    *, T, B):
    H = ewhh_ref.shape[0]
    H4 = 4 * H
    K = wy_ref.shape[1]
    Dz = wc_ref.shape[1]
    Dx = boutb_ref.shape[1] // T

    def lstm_cell(gates, c):
        # one whole-row sigmoid pass on the EUP; tanh only on the g slice; all f32
        sig = jax.nn.sigmoid(gates)
        g = jnp.tanh(gates[:, 2 * H:3 * H])
        i = sig[:, 0:H]
        f = sig[:, H:2 * H]
        o = sig[:, 3 * H:4 * H]
        c_new = f * c + i * g
        return o * jnp.tanh(c_new), c_new

    # ---------------- encoder LSTM ----------------
    # Hoisted block-diagonal input projection: one (B, T*Dx)@(T*Dx, T*4H) MXU
    # pass; per-step gate slices are 128-lane-aligned (free vreg picks).
    gx = jnp.dot(x_ref[...], ewih_big_ref[...],
                 preferred_element_type=jnp.float32) + eb_big_ref[...]
    ewhh = ewhh_ref[...]                               # bf16
    # step 0 peeled (h_{-1} = c_{-1} = 0)
    h, c = lstm_cell(gx[:, 0:H4], jnp.zeros((B, H), jnp.float32))
    for t in range(1, T):                              # fully unrolled
        gates = gx[:, t * H4:(t + 1) * H4] + jnp.dot(
            h.astype(jnp.bfloat16), ewhh, preferred_element_type=jnp.float32)
        h, c = lstm_cell(gates, c)

    # ---------------- head ----------------
    qyx = jnp.dot(h, wy_ref[...], preferred_element_type=jnp.float32) + by_ref[...]
    logits = qyx + g_ref[...]
    # gumbel_softmax(hard=True): forward value is the one-hot of argmax(logits).
    # TODO(synk): straight-through gradient (hard=True backward) not represented.
    m = jnp.max(logits, axis=-1, keepdims=True)
    iota = lax.broadcasted_iota(jnp.int32, logits.shape, 1)
    idx = jnp.min(jnp.where(logits == m, iota, jnp.int32(K)),
                  axis=-1, keepdims=True)              # first-max index
    y = (iota == idx).astype(jnp.float32)

    zb = jnp.dot(h, wzb_ref[...], preferred_element_type=jnp.float32) + bzb_ref[...]
    zc = jnp.dot(y, wc_ref[...], preferred_element_type=jnp.float32) + bc_ref[...]
    z = zc + zb

    # zero-init the slab (one full unmasked store) and drop the head outputs in
    # early so their small masked stores overlap the decoder chain.
    c0 = T * Dx
    out_ref[...] = jnp.zeros(out_ref.shape, jnp.float32)
    out_ref[0:B, c0:c0 + K] = y
    out_ref[0:B, c0 + K:c0 + K + Dz] = zb
    out_ref[0:B, c0 + K + Dz:c0 + K + 2 * Dz] = z

    # ---------- decoder: BOTH rollouts batched as rows [zc ; z] ----------
    init2 = jnp.concatenate([zc, z], axis=0)           # (2B, Dz), registers
    db = db_ref[...]
    wf = dwf_ref[...]                                   # bf16 (H, 4H)

    # step 0 peeled: gates = init @ W_ih + b   (h_{-1} = c_{-1} = 0)
    gates = jnp.dot(init2, dwih_ref[...], preferred_element_type=jnp.float32) + db
    h_raw, cd = lstm_cell(gates, jnp.zeros((2 * B, H), jnp.float32))
    hs = [h_raw]
    for t in range(1, T):                               # fully unrolled
        # input at t>0 equals prev projected hidden; dec_whr folded into wf,
        # so ONE matmul per step on the serial chain.
        gates = jnp.dot(h_raw.astype(jnp.bfloat16), wf,
                        preferred_element_type=jnp.float32) + db
        h_raw, cd = lstm_cell(gates, cd)
        hs.append(h_raw)

    # single block-diagonal projection (2B, T*H)@(T*H, T*Dx); hiddens never
    # touch VMEM scratch.
    hcat = jnp.concatenate(hs, axis=1)                  # (2B, T*H)
    xall = jnp.dot(hcat, woutb_ref[...],
                   preferred_element_type=jnp.float32) + boutb_ref[...]
    out_ref[0:2 * B, 0:c0] = xall


# --------------------------------------------------------------------------
# One-time parameter preparation (param-only; keep OFF the per-call hot path).
# --------------------------------------------------------------------------
def prepare_params(params, T, zb_std):
    f32 = jnp.float32
    eye_t = jnp.eye(T, dtype=f32)
    inv = jnp.asarray(1.0 / zb_std, f32)

    dec_wfused = params["dec_whr"] @ (params["dec_wih"] + params["dec_whh"])  # (H,4H)
    proj = params["dec_whr"] @ params["out_w"]                                # (H,Dx)

    return {
        # encoder
        "enc_wih_big": jnp.kron(eye_t, params["enc_wih"]),        # (T*Dx, T*4H)
        "enc_b_big": jnp.tile(params["enc_b"], (1, T)),           # (1, T*4H)
        "enc_whh_bf": params["enc_whh"].astype(jnp.bfloat16),     # (H, 4H)
        # head (zb_std / zb_mean folded into fc_zb)
        "wy": params["wy"], "by": params["by"],
        "wzb_s": params["wzb"] * inv,
        "bzb_s": (params["bzb"] - params["zb_mean"]) * inv,
        "wc": params["wc"], "bc": params["bc"],
        # decoder
        "dec_wih": params["dec_wih"], "dec_b": params["dec_b"],
        "dec_wfused_bf": dec_wfused.astype(jnp.bfloat16),         # (H, 4H)
        "wout_big": jnp.kron(eye_t, proj),                        # (T*H, T*Dx)
        "bout_big": jnp.tile(params["out_b"], (1, T)),            # (1, T*Dx)
    }


# --------------------------------------------------------------------------
# Wrapper: single pallas_call, everything resident in VMEM (tiny shapes),
# one packed lane-dense output slab sliced apart here.
# --------------------------------------------------------------------------
def vambc_forward(x, prep, gumbel_key):
    B, T, Dx = x.shape
    K = prep["wy"].shape[1]
    Dz = prep["wc"].shape[1]

    x2 = x.reshape(B, T * Dx).astype(jnp.float32)      # free reshape (contiguous)
    gnoise = jax.random.gumbel(gumbel_key, (B, K), dtype=jnp.float32)

    cols_used = T * Dx + K + 2 * Dz
    R = ((2 * B + 7) // 8) * 8
    C = ((cols_used + 127) // 128) * 128

    vmem = lambda: pl.BlockSpec(memory_space=pltpu.MemorySpace.VMEM)

    slab = pl.pallas_call(
        functools.partial(vambc_fused_kernel, T=T, B=B),
        out_shape=jax.ShapeDtypeStruct((R, C), jnp.float32),
        in_specs=[vmem() for _ in range(16)],
        out_specs=vmem(),
    )(x2, gnoise,
      prep["enc_wih_big"], prep["enc_b_big"], prep["enc_whh_bf"],
      prep["wy"], prep["by"], prep["wzb_s"], prep["bzb_s"],
      prep["wc"], prep["bc"],
      prep["dec_wih"], prep["dec_b"], prep["dec_wfused_bf"],
      prep["wout_big"], prep["bout_big"])

    c0 = T * Dx
    xall = slab[0:2 * B, 0:c0].reshape(2 * B, T, Dx)
    y = slab[0:B, c0:c0 + K]
    zb = slab[0:B, c0 + K:c0 + K + Dz]
    z = slab[0:B, c0 + K + Dz:c0 + K + 2 * Dz]
    return y, zb, xall[:B], xall[B:], z


# --------------------------------------------------------------------------
# Deterministic parameter construction + smoke test.
# --------------------------------------------------------------------------
def init_params(key, dim_x, dim_lstm, dim_z, num_clusters):
    ks = jax.random.split(key, 16)
    s = 0.1
    return {
        # encoder LSTM(dim_x -> dim_lstm)            (bias = b_ih + b_hh)
        "enc_wih": jax.random.normal(ks[0], (dim_x, 4 * dim_lstm), jnp.float32) * s,
        "enc_whh": jax.random.normal(ks[1], (dim_lstm, 4 * dim_lstm), jnp.float32) * s,
        "enc_b":   jax.random.normal(ks[2], (1, 4 * dim_lstm), jnp.float32) * s,
        # decoder LSTM(dim_z -> dim_lstm, proj_size=dim_z)
        "dec_wih": jax.random.normal(ks[3], (dim_z, 4 * dim_lstm), jnp.float32) * s,
        "dec_whh": jax.random.normal(ks[4], (dim_z, 4 * dim_lstm), jnp.float32) * s,
        "dec_b":   jax.random.normal(ks[5], (1, 4 * dim_lstm), jnp.float32) * s,
        "dec_whr": jax.random.normal(ks[6], (dim_lstm, dim_z), jnp.float32) * s,
        # output Linear(dim_z -> dim_x)
        "out_w":   jax.random.normal(ks[7], (dim_z, dim_x), jnp.float32) * s,
        "out_b":   jax.random.normal(ks[8], (1, dim_x), jnp.float32) * s,
        # fc_y Linear(dim_lstm -> num_clusters)
        "wy":      jax.random.normal(ks[9], (dim_lstm, num_clusters), jnp.float32) * s,
        "by":      jax.random.normal(ks[10], (1, num_clusters), jnp.float32) * s,
        # fc_cluster Linear(num_clusters -> dim_z)
        "wc":      jax.random.normal(ks[11], (num_clusters, dim_z), jnp.float32) * s,
        "bc":      jax.random.normal(ks[12], (1, dim_z), jnp.float32) * s,
        # fc_zb Linear(dim_lstm -> dim_z)
        "wzb":     jax.random.normal(ks[13], (dim_lstm, dim_z), jnp.float32) * s,
        "bzb":     jax.random.normal(ks[14], (1, dim_z), jnp.float32) * s,
        # zb_mean Parameter(zeros(dim_z))
        "zb_mean": jnp.zeros((1, dim_z), jnp.float32),
    }


if __name__ == "__main__":
    dim_x, dim_lstm, dim_z, num_clusters = 4, 32, 8, 4
    zb_std = 0.5
    batch, seq_len = 2, 8

    root = jax.random.PRNGKey(0)
    k_param, k_x, k_gumbel = jax.random.split(root, 3)

    params = init_params(k_param, dim_x, dim_lstm, dim_z, num_clusters)
    prep = prepare_params(params, seq_len, zb_std)   # one-time, off the hot path
    x = jax.random.normal(k_x, (batch, seq_len, dim_x), jnp.float32)

    fwd = jax.jit(vambc_forward)
    y, zb, xc, xp, z = fwd(x, prep, k_gumbel)
    jax.block_until_ready((y, zb, xc, xp, z))

    # Sanity checks on shapes / values.
    assert y.shape == (batch, num_clusters)
    assert zb.shape == (batch, dim_z)
    assert xc.shape == (batch, seq_len, dim_x)
    assert xp.shape == (batch, seq_len, dim_x)
    assert z.shape == (batch, dim_z)
    # hard gumbel-softmax rows must be exactly one-hot
    assert bool(jnp.all(jnp.sum(y, axis=-1) == 1.0))
    assert bool(jnp.all((y == 0.0) | (y == 1.0)))
    assert bool(jnp.all(jnp.isfinite(xc))) and bool(jnp.all(jnp.isfinite(xp)))
    assert bool(jnp.all(jnp.isfinite(zb))) and bool(jnp.all(jnp.isfinite(z)))

    print("KERNEL_OK")
</pallas_src>

<mosaic_0001>
module attributes {stable_mosaic.version = 11 : i64} {
  func.func @vambc_fused_kernel(%arg0: memref<2x32xf32, #tpu.memory_space<vmem>>, %arg1: memref<2x4xf32, #tpu.memory_space<vmem>>, %arg2: memref<32x1024xf32, #tpu.memory_space<vmem>>, %arg3: memref<1x1024xf32, #tpu.memory_space<vmem>>, %arg4: memref<32x128xbf16, #tpu.memory_space<vmem>>, %arg5: memref<32x4xf32, #tpu.memory_space<vmem>>, %arg6: memref<1x4xf32, #tpu.memory_space<vmem>>, %arg7: memref<32x8xf32, #tpu.memory_space<vmem>>, %arg8: memref<1x8xf32, #tpu.memory_space<vmem>>, %arg9: memref<4x8xf32, #tpu.memory_space<vmem>>, %arg10: memref<1x8xf32, #tpu.memory_space<vmem>>, %arg11: memref<8x128xf32, #tpu.memory_space<vmem>>, %arg12: memref<1x128xf32, #tpu.memory_space<vmem>>, %arg13: memref<32x128xbf16, #tpu.memory_space<vmem>>, %arg14: memref<256x32xf32, #tpu.memory_space<vmem>>, %arg15: memref<1x32xf32, #tpu.memory_space<vmem>>, %arg16: memref<8x128xf32, #tpu.memory_space<vmem>>) attributes {dimension_semantics = [], scalar_prefetch = 0 : i64, scratch_operands = 0 : i64, tpu.core_type = #tpu.core_type<tc>} {
    %c0 = arith.constant 0 : index
    %c0_0 = arith.constant 0 : index
    %0 = vector.load %arg0[%c0, %c0_0] : memref<2x32xf32, #tpu.memory_space<vmem>>, vector<2x32xf32>
    %c0_1 = arith.constant 0 : index
    %c0_2 = arith.constant 0 : index
    %1 = vector.load %arg2[%c0_1, %c0_2] : memref<32x1024xf32, #tpu.memory_space<vmem>>, vector<32x1024xf32>
    %cst = arith.constant dense<0.000000e+00> : vector<2x1024xf32>
    %2 = tpu.matmul %0, %1, %cst {dimension_numbers = #tpu.dot_dimension_numbers<[1], [0], [0], [1], [0, 0, 1, 1], [], []>} : vector<2x32xf32>, vector<32x1024xf32>, vector<2x1024xf32> -> vector<2x1024xf32>
    %c0_3 = arith.constant 0 : index
    %c0_4 = arith.constant 0 : index
    %3 = vector.load %arg3[%c0_3, %c0_4] : memref<1x1024xf32, #tpu.memory_space<vmem>>, vector<1x1024xf32>
    %4 = vector.broadcast %3 : vector<1x1024xf32> to vector<2x1024xf32>
    %5 = arith.addf %2, %4 : vector<2x1024xf32>
    %c0_5 = arith.constant 0 : index
    %c0_6 = arith.constant 0 : index
    %6 = vector.load %arg4[%c0_5, %c0_6] : memref<32x128xbf16, #tpu.memory_space<vmem>>, vector<32x128xbf16>
    %7 = vector.extract_strided_slice %5 {offsets = [0, 0], sizes = [2, 128], strides = [1, 1]} : vector<2x1024xf32> to vector<2x128xf32>
    %cst_7 = arith.constant 0.000000e+00 : f32
    %8 = vector.broadcast %cst_7 : f32 to vector<2x32xf32>
    %9 = arith.negf %7 : vector<2x128xf32>
    %10 = math.exp %9 : vector<2x128xf32>
    %cst_8 = arith.constant 1.000000e+00 : f32
    %11 = vector.broadcast %cst_8 : f32 to vector<2x128xf32>
    %12 = arith.addf %11, %10 : vector<2x128xf32>
    %13 = arith.divf %11, %12 : vector<2x128xf32>
    %14 = vector.extract_strided_slice %7 {offsets = [0, 64], sizes = [2, 32], strides = [1, 1]} : vector<2x128xf32> to vector<2x32xf32>
    %15 = math.tanh %14 : vector<2x32xf32>
    %16 = vector.extract_strided_slice %13 {offsets = [0, 0], sizes = [2, 32], strides = [1, 1]} : vector<2x128xf32> to vector<2x32xf32>
    %17 = vector.extract_strided_slice %13 {offsets = [0, 32], sizes = [2, 32], strides = [1, 1]} : vector<2x128xf32> to vector<2x32xf32>
    %18 = vector.extract_strided_slice %13 {offsets = [0, 96], sizes = [2, 32], strides = [1, 1]} : vector<2x128xf32> to vector<2x32xf32>
    %19 = arith.mulf %17, %8 : vector<2x32xf32>
    %20 = arith.mulf %16, %15 : vector<2x32xf32>
    %21 = arith.addf %19, %20 : vector<2x32xf32>
    %22 = math.tanh %21 : vector<2x32xf32>
    %23 = arith.mulf %18, %22 : vector<2x32xf32>
    %24 = vector.extract_strided_slice %5 {offsets = [0, 128], sizes = [2, 128], strides = [1, 1]} : vector<2x1024xf32> to vector<2x128xf32>
    %25 = arith.truncf %23 : vector<2x32xf32> to vector<2x32xbf16>
    %cst_9 = arith.constant dense<0.000000e+00> : vector<2x128xf32>
    %26 = tpu.matmul %25, %6, %cst_9 {dimension_numbers = #tpu.dot_dimension_numbers<[1], [0], [0], [1], [0, 0, 1, 1], [], []>} : vector<2x32xbf16>, vector<32x128xbf16>, vector<2x128xf32> -> vector<2x128xf32>
    %27 = arith.addf %24, %26 : vector<2x128xf32>
    %28 = arith.negf %27 : vector<2x128xf32>
    %29 = math.exp %28 : vector<2x128xf32>
    %cst_10 = arith.constant 1.000000e+00 : f32
    %30 = vector.broadcast %cst_10 : f32 to vector<2x128xf32>
    %31 = arith.addf %30, %29 : vector<2x128xf32>
    %32 = arith.divf %30, %31 : vector<2x128xf32>
    %33 = vector.extract_strided_slice %27 {offsets = [0, 64], sizes = [2, 32], strides = [1, 1]} : vector<2x128xf32> to vector<2x32xf32>
    %34 = math.tanh %33 : vector<2x32xf32>
    %35 = vector.extract_strided_slice %32 {offsets = [0, 0], sizes = [2, 32], strides = [1, 1]} : vector<2x128xf32> to vector<2x32xf32>
    %36 = vector.extract_strided_slice %32 {offsets = [0, 32], sizes = [2, 32], strides = [1, 1]} : vector<2x128xf32> to vector<2x32xf32>
    %37 = vector.extract_strided_slice %32 {offsets = [0, 96], sizes = [2, 32], strides = [1, 1]} : vector<2x128xf32> to vector<2x32xf32>
    %38 = arith.mulf %36, %21 : vector<2x32xf32>
    %39 = arith.mulf %35, %34 : vector<2x32xf32>
    %40 = arith.addf %38, %39 : vector<2x32xf32>
    %41 = math.tanh %40 : vector<2x32xf32>
    %42 = arith.mulf %37, %41 : vector<2x32xf32>
    %43 = vector.extract_strided_slice %5 {offsets = [0, 256], sizes = [2, 128], strides = [1, 1]} : vector<2x1024xf32> to vector<2x128xf32>
    %44 = arith.truncf %42 : vector<2x32xf32> to vector<2x32xbf16>
    %cst_11 = arith.constant dense<0.000000e+00> : vector<2x128xf32>
    %45 = tpu.matmul %44, %6, %cst_11 {dimension_numbers = #tpu.dot_dimension_numbers<[1], [0], [0], [1], [0, 0, 1, 1], [], []>} : vector<2x32xbf16>, vector<32x128xbf16>, vector<2x128xf32> -> vector<2x128xf32>
    %46 = arith.addf %43, %45 : vector<2x128xf32>
    %47 = arith.negf %46 : vector<2x128xf32>
    %48 = math.exp %47 : vector<2x128xf32>
    %cst_12 = arith.constant 1.000000e+00 : f32
    %49 = vector.broadcast %cst_12 : f32 to vector<2x128xf32>
    %50 = arith.addf %49, %48 : vector<2x128xf32>
    %51 = arith.divf %49, %50 : vector<2x128xf32>
    %52 = vector.extract_strided_slice %46 {offsets = [0, 64], sizes = [2, 32], strides = [1, 1]} : vector<2x128xf32> to vector<2x32xf32>
    %53 = math.tanh %52 : vector<2x32xf32>
    %54 = vector.extract_strided_slice %51 {offsets = [0, 0], sizes = [2, 32], strides = [1, 1]} : vector<2x128xf32> to vector<2x32xf32>
    %55 = vector.extract_strided_slice %51 {offsets = [0, 32], sizes = [2, 32], strides = [1, 1]} : vector<2x128xf32> to vector<2x32xf32>
    %56 = vector.extract_strided_slice %51 {offsets = [0, 96], sizes = [2, 32], strides = [1, 1]} : vector<2x128xf32> to vector<2x32xf32>
    %57 = arith.mulf %55, %40 : vector<2x32xf32>
    %58 = arith.mulf %54, %53 : vector<2x32xf32>
    %59 = arith.addf %57, %58 : vector<2x32xf32>
    %60 = math.tanh %59 : vector<2x32xf32>
    %61 = arith.mulf %56, %60 : vector<2x32xf32>
    %62 = vector.extract_strided_slice %5 {offsets = [0, 384], sizes = [2, 128], strides = [1, 1]} : vector<2x1024xf32> to vector<2x128xf32>
    %63 = arith.truncf %61 : vector<2x32xf32> to vector<2x32xbf16>
    %cst_13 = arith.constant dense<0.000000e+00> : vector<2x128xf32>
    %64 = tpu.matmul %63, %6, %cst_13 {dimension_numbers = #tpu.dot_dimension_numbers<[1], [0], [0], [1], [0, 0, 1, 1], [], []>} : vector<2x32xbf16>, vector<32x128xbf16>, vector<2x128xf32> -> vector<2x128xf32>
    %65 = arith.addf %62, %64 : vector<2x128xf32>
    %66 = arith.negf %65 : vector<2x128xf32>
    %67 = math.exp %66 : vector<2x128xf32>
    %cst_14 = arith.constant 1.000000e+00 : f32
    %68 = vector.broadcast %cst_14 : f32 to vector<2x128xf32>
    %69 = arith.addf %68, %67 : vector<2x128xf32>
    %70 = arith.divf %68, %69 : vector<2x128xf32>
    %71 = vector.extract_strided_slice %65 {offsets = [0, 64], sizes = [2, 32], strides = [1, 1]} : vector<2x128xf32> to vector<2x32xf32>
    %72 = math.tanh %71 : vector<2x32xf32>
    %73 = vector.extract_strided_slice %70 {offsets = [0, 0], sizes = [2, 32], strides = [1, 1]} : vector<2x128xf32> to vector<2x32xf32>
    %74 = vector.extract_strided_slice %70 {offsets = [0, 32], sizes = [2, 32], strides = [1, 1]} : vector<2x128xf32> to vector<2x32xf32>
    %75 = vector.extract_strided_slice %70 {offsets = [0, 96], sizes = [2, 32], strides = [1, 1]} : vector<2x128xf32> to vector<2x32xf32>
    %76 = arith.mulf %74, %59 : vector<2x32xf32>
    %77 = arith.mulf %73, %72 : vector<2x32xf32>
    %78 = arith.addf %76, %77 : vector<2x32xf32>
    %79 = math.tanh %78 : vector<2x32xf32>
    %80 = arith.mulf %75, %79 : vector<2x32xf32>
    %81 = vector.extract_strided_slice %5 {offsets = [0, 512], sizes = [2, 128], strides = [1, 1]} : vector<2x1024xf32> to vector<2x128xf32>
    %82 = arith.truncf %80 : vector<2x32xf32> to vector<2x32xbf16>
    %cst_15 = arith.constant dense<0.000000e+00> : vector<2x128xf32>
    %83 = tpu.matmul %82, %6, %cst_15 {dimension_numbers = #tpu.dot_dimension_numbers<[1], [0], [0], [1], [0, 0, 1, 1], [], []>} : vector<2x32xbf16>, vector<32x128xbf16>, vector<2x128xf32> -> vector<2x128xf32>
    %84 = arith.addf %81, %83 : vector<2x128xf32>
    %85 = arith.negf %84 : vector<2x128xf32>
    %86 = math.exp %85 : vector<2x128xf32>
    %cst_16 = arith.constant 1.000000e+00 : f32
    %87 = vector.broadcast %cst_16 : f32 to vector<2x128xf32>
    %88 = arith.addf %87, %86 : vector<2x128xf32>
    %89 = arith.divf %87, %88 : vector<2x128xf32>
    %90 = vector.extract_strided_slice %84 {offsets = [0, 64], sizes = [2, 32], strides = [1, 1]} : vector<2x128xf32> to vector<2x32xf32>
    %91 = math.tanh %90 : vector<2x32xf32>
    %92 = vector.extract_strided_slice %89 {offsets = [0, 0], sizes = [2, 32], strides = [1, 1]} : vector<2x128xf32> to vector<2x32xf32>
    %93 = vector.extract_strided_slice %89 {offsets = [0, 32], sizes = [2, 32], strides = [1, 1]} : vector<2x128xf32> to vector<2x32xf32>
    %94 = vector.extract_strided_slice %89 {offsets = [0, 96], sizes = [2, 32], strides = [1, 1]} : vector<2x128xf32> to vector<2x32xf32>
    %95 = arith.mulf %93, %78 : vector<2x32xf32>
    %96 = arith.mulf %92, %91 : vector<2x32xf32>
    %97 = arith.addf %95, %96 : vector<2x32xf32>
    %98 = math.tanh %97 : vector<2x32xf32>
    %99 = arith.mulf %94, %98 : vector<2x32xf32>
    %100 = vector.extract_strided_slice %5 {offsets = [0, 640], sizes = [2, 128], strides = [1, 1]} : vector<2x1024xf32> to vector<2x128xf32>
    %101 = arith.truncf %99 : vector<2x32xf32> to vector<2x32xbf16>
    %cst_17 = arith.constant dense<0.000000e+00> : vector<2x128xf32>
    %102 = tpu.matmul %101, %6, %cst_17 {dimension_numbers = #tpu.dot_dimension_numbers<[1], [0], [0], [1], [0, 0, 1, 1], [], []>} : vector<2x32xbf16>, vector<32x128xbf16>, vector<2x128xf32> -> vector<2x128xf32>
    %103 = arith.addf %100, %102 : vector<2x128xf32>
    %104 = arith.negf %103 : vector<2x128xf32>
    %105 = math.exp %104 : vector<2x128xf32>
    %cst_18 = arith.constant 1.000000e+00 : f32
    %106 = vector.broadcast %cst_18 : f32 to vector<2x128xf32>
    %107 = arith.addf %106, %105 : vector<2x128xf32>
    %108 = arith.divf %106, %107 : vector<2x128xf32>
    %109 = vector.extract_strided_slice %103 {offsets = [0, 64], sizes = [2, 32], strides = [1, 1]} : vector<2x128xf32> to vector<2x32xf32>
    %110 = math.tanh %109 : vector<2x32xf32>
    %111 = vector.extract_strided_slice %108 {offsets = [0, 0], sizes = [2, 32], strides = [1, 1]} : vector<2x128xf32> to vector<2x32xf32>
    %112 = vector.extract_strided_slice %108 {offsets = [0, 32], sizes = [2, 32], strides = [1, 1]} : vector<2x128xf32> to vector<2x32xf32>
    %113 = vector.extract_strided_slice %108 {offsets = [0, 96], sizes = [2, 32], strides = [1, 1]} : vector<2x128xf32> to vector<2x32xf32>
    %114 = arith.mulf %112, %97 : vector<2x32xf32>
    %115 = arith.mulf %111, %110 : vector<2x32xf32>
    %116 = arith.addf %114, %115 : vector<2x32xf32>
    %117 = math.tanh %116 : vector<2x32xf32>
    %118 = arith.mulf %113, %117 : vector<2x32xf32>
    %119 = vector.extract_strided_slice %5 {offsets = [0, 768], sizes = [2, 128], strides = [1, 1]} : vector<2x1024xf32> to vector<2x128xf32>
    %120 = arith.truncf %118 : vector<2x32xf32> to vector<2x32xbf16>
    %cst_19 = arith.constant dense<0.000000e+00> : vector<2x128xf32>
    %121 = tpu.matmul %120, %6, %cst_19 {dimension_numbers = #tpu.dot_dimension_numbers<[1], [0], [0], [1], [0, 0, 1, 1], [], []>} : vector<2x32xbf16>, vector<32x128xbf16>, vector<2x128xf32> -> vector<2x128xf32>
    %122 = arith.addf %119, %121 : vector<2x128xf32>
    %123 = arith.negf %122 : vector<2x128xf32>
    %124 = math.exp %123 : vector<2x128xf32>
    %cst_20 = arith.constant 1.000000e+00 : f32
    %125 = vector.broadcast %cst_20 : f32 to vector<2x128xf32>
    %126 = arith.addf %125, %124 : vector<2x128xf32>
    %127 = arith.divf %125, %126 : vector<2x128xf32>
    %128 = vector.extract_strided_slice %122 {offsets = [0, 64], sizes = [2, 32], strides = [1, 1]} : vector<2x128xf32> to vector<2x32xf32>
    %129 = math.tanh %128 : vector<2x32xf32>
    %130 = vector.extract_strided_slice %127 {offsets = [0, 0], sizes = [2, 32], strides = [1, 1]} : vector<2x128xf32> to vector<2x32xf32>
    %131 = vector.extract_strided_slice %127 {offsets = [0, 32], sizes = [2, 32], strides = [1, 1]} : vector<2x128xf32> to vector<2x32xf32>
    %132 = vector.extract_strided_slice %127 {offsets = [0, 96], sizes = [2, 32], strides = [1, 1]} : vector<2x128xf32> to vector<2x32xf32>
    %133 = arith.mulf %131, %116 : vector<2x32xf32>
    %134 = arith.mulf %130, %129 : vector<2x32xf32>
    %135 = arith.addf %133, %134 : vector<2x32xf32>
    %136 = math.tanh %135 : vector<2x32xf32>
    %137 = arith.mulf %132, %136 : vector<2x32xf32>
    %138 = vector.extract_strided_slice %5 {offsets = [0, 896], sizes = [2, 128], strides = [1, 1]} : vector<2x1024xf32> to vector<2x128xf32>
    %139 = arith.truncf %137 : vector<2x32xf32> to vector<2x32xbf16>
    %cst_21 = arith.constant dense<0.000000e+00> : vector<2x128xf32>
    %140 = tpu.matmul %139, %6, %cst_21 {dimension_numbers = #tpu.dot_dimension_numbers<[1], [0], [0], [1], [0, 0, 1, 1], [], []>} : vector<2x32xbf16>, vector<32x128xbf16>, vector<2x128xf32> -> vector<2x128xf32>
    %141 = arith.addf %138, %140 : vector<2x128xf32>
    %142 = arith.negf %141 : vector<2x128xf32>
    %143 = math.exp %142 : vector<2x128xf32>
    %cst_22 = arith.constant 1.000000e+00 : f32
    %144 = vector.broadcast %cst_22 : f32 to vector<2x128xf32>
    %145 = arith.addf %144, %143 : vector<2x128xf32>
    %146 = arith.divf %144, %145 : vector<2x128xf32>
    %147 = vector.extract_strided_slice %141 {offsets = [0, 64], sizes = [2, 32], strides = [1, 1]} : vector<2x128xf32> to vector<2x32xf32>
    %148 = math.tanh %147 : vector<2x32xf32>
    %149 = vector.extract_strided_slice %146 {offsets = [0, 0], sizes = [2, 32], strides = [1, 1]} : vector<2x128xf32> to vector<2x32xf32>
    %150 = vector.extract_strided_slice %146 {offsets = [0, 32], sizes = [2, 32], strides = [1, 1]} : vector<2x128xf32> to vector<2x32xf32>
    %151 = vector.extract_strided_slice %146 {offsets = [0, 96], sizes = [2, 32], strides = [1, 1]} : vector<2x128xf32> to vector<2x32xf32>
    %152 = arith.mulf %150, %135 : vector<2x32xf32>
    %153 = arith.mulf %149, %148 : vector<2x32xf32>
    %154 = arith.addf %152, %153 : vector<2x32xf32>
    %155 = math.tanh %154 : vector<2x32xf32>
    %156 = arith.mulf %151, %155 : vector<2x32xf32>
    %c0_23 = arith.constant 0 : index
    %c0_24 = arith.constant 0 : index
    %157 = vector.load %arg5[%c0_23, %c0_24] : memref<32x4xf32, #tpu.memory_space<vmem>>, vector<32x4xf32>
    %cst_25 = arith.constant dense<0.000000e+00> : vector<2x4xf32>
    %158 = tpu.matmul %156, %157, %cst_25 {dimension_numbers = #tpu.dot_dimension_numbers<[1], [0], [0], [1], [0, 0, 1, 1], [], []>} : vector<2x32xf32>, vector<32x4xf32>, vector<2x4xf32> -> vector<2x4xf32>
    %c0_26 = arith.constant 0 : index
    %c0_27 = arith.constant 0 : index
    %159 = vector.load %arg6[%c0_26, %c0_27] : memref<1x4xf32, #tpu.memory_space<vmem>>, vector<1x4xf32>
    %160 = vector.broadcast %159 : vector<1x4xf32> to vector<2x4xf32>
    %161 = arith.addf %158, %160 : vector<2x4xf32>
    %c0_28 = arith.constant 0 : index
    %c0_29 = arith.constant 0 : index
    %162 = vector.load %arg1[%c0_28, %c0_29] : memref<2x4xf32, #tpu.memory_space<vmem>>, vector<2x4xf32>
    %163 = arith.addf %161, %162 : vector<2x4xf32>
    %cst_30 = arith.constant dense<0xFF800000> : vector<2xf32>
    %164 = vector.multi_reduction <maximumf>, %163, %cst_30 [1] : vector<2x4xf32> to vector<2xf32>
    %165 = vector.shape_cast %164 : vector<2xf32> to vector<2x1xf32>
    %166 = tpu.iota {dimensions = array<i32: 1>} : vector<2x4xi32>
    %167 = vector.broadcast %165 : vector<2x1xf32> to vector<2x4xf32>
    %168 = arith.cmpf oeq, %163, %167 : vector<2x4xf32>
    %c4_i32 = arith.constant 4 : i32
    %169 = vector.broadcast %c4_i32 : i32 to vector<2x4xi32>
    %170 = arith.select %168, %166, %169 : vector<2x4xi1>, vector<2x4xi32>
    %cst_31 = arith.constant dense<2147483647> : vector<2xi32>
    %171 = vector.multi_reduction <minsi>, %170, %cst_31 [1] : vector<2x4xi32> to vector<2xi32>
    %172 = vector.shape_cast %171 : vector<2xi32> to vector<2x1xi32>
    %173 = vector.broadcast %172 : vector<2x1xi32> to vector<2x4xi32>
    %174 = arith.cmpi eq, %166, %173 : vector<2x4xi32>
    %175 = arith.extui %174 : vector<2x4xi1> to vector<2x4xi32>
    %176 = arith.sitofp %175 : vector<2x4xi32> to vector<2x4xf32>
    %c0_32 = arith.constant 0 : index
    %c0_33 = arith.constant 0 : index
    %177 = vector.load %arg7[%c0_32, %c0_33] : memref<32x8xf32, #tpu.memory_space<vmem>>, vector<32x8xf32>
    %cst_34 = arith.constant dense<0.000000e+00> : vector<2x8xf32>
    %178 = tpu.matmul %156, %177, %cst_34 {dimension_numbers = #tpu.dot_dimension_numbers<[1], [0], [0], [1], [0, 0, 1, 1], [], []>} : vector<2x32xf32>, vector<32x8xf32>, vector<2x8xf32> -> vector<2x8xf32>
    %c0_35 = arith.constant 0 : index
    %c0_36 = arith.constant 0 : index
    %179 = vector.load %arg8[%c0_35, %c0_36] : memref<1x8xf32, #tpu.memory_space<vmem>>, vector<1x8xf32>
    %180 = vector.broadcast %179 : vector<1x8xf32> to vector<2x8xf32>
    %181 = arith.addf %178, %180 : vector<2x8xf32>
    %c0_37 = arith.constant 0 : index
    %c0_38 = arith.constant 0 : index
    %182 = vector.load %arg9[%c0_37, %c0_38] : memref<4x8xf32, #tpu.memory_space<vmem>>, vector<4x8xf32>
    %cst_39 = arith.constant dense<0.000000e+00> : vector<2x8xf32>
    %183 = tpu.matmul %176, %182, %cst_39 {dimension_numbers = #tpu.dot_dimension_numbers<[1], [0], [0], [1], [0, 0, 1, 1], [], []>} : vector<2x4xf32>, vector<4x8xf32>, vector<2x8xf32> -> vector<2x8xf32>
    %c0_40 = arith.constant 0 : index
    %c0_41 = arith.constant 0 : index
    %184 = vector.load %arg10[%c0_40, %c0_41] : memref<1x8xf32, #tpu.memory_space<vmem>>, vector<1x8xf32>
    %185 = vector.broadcast %184 : vector<1x8xf32> to vector<2x8xf32>
    %186 = arith.addf %183, %185 : vector<2x8xf32>
    %187 = arith.addf %186, %181 : vector<2x8xf32>
    %cst_42 = arith.constant 0.000000e+00 : f32
    %188 = vector.broadcast %cst_42 : f32 to vector<8x128xf32>
    %c0_43 = arith.constant 0 : index
    %c0_44 = arith.constant 0 : index
    %189 = vector.load %arg16[%c0_43, %c0_44] : memref<8x128xf32, #tpu.memory_space<vmem>>, vector<8x128xf32>
    tpu.vector_store %arg16[%c0_43, %c0_44], %188 {strides = array<i32>} : memref<8x128xf32, #tpu.memory_space<vmem>>, vector<8x128xf32>,
    %c0_45 = arith.constant 0 : index
    %c32 = arith.constant 32 : index
    %190 = vector.load %arg16[%c0_45, %c32] : memref<8x128xf32, #tpu.memory_space<vmem>>, vector<2x4xf32>
    tpu.vector_store %arg16[%c0_45, %c32], %176 {strides = array<i32>} : memref<8x128xf32, #tpu.memory_space<vmem>>, vector<2x4xf32>,
    %c0_46 = arith.constant 0 : index
    %c36 = arith.constant 36 : index
    %191 = vector.load %arg16[%c0_46, %c36] : memref<8x128xf32, #tpu.memory_space<vmem>>, vector<2x8xf32>
    tpu.vector_store %arg16[%c0_46, %c36], %181 {strides = array<i32>} : memref<8x128xf32, #tpu.memory_space<vmem>>, vector<2x8xf32>,
    %c0_47 = arith.constant 0 : index
    %c44 = arith.constant 44 : index
    %192 = vector.load %arg16[%c0_47, %c44] : memref<8x128xf32, #tpu.memory_space<vmem>>, vector<2x8xf32>
    tpu.vector_store %arg16[%c0_47, %c44], %187 {strides = array<i32>} : memref<8x128xf32, #tpu.memory_space<vmem>>, vector<2x8xf32>,
    %193 = tpu.concatenate %186, %187 in 0 : vector<2x8xf32>, vector<2x8xf32> -> vector<4x8xf32>
    %c0_48 = arith.constant 0 : index
    %c0_49 = arith.constant 0 : index
    %194 = vector.load %arg12[%c0_48, %c0_49] : memref<1x128xf32, #tpu.memory_space<vmem>>, vector<1x128xf32>
    %c0_50 = arith.constant 0 : index
    %c0_51 = arith.constant 0 : index
    %195 = vector.load %arg13[%c0_50, %c0_51] : memref<32x128xbf16, #tpu.memory_space<vmem>>, vector<32x128xbf16>
    %c0_52 = arith.constant 0 : index
    %c0_53 = arith.constant 0 : index
    %196 = vector.load %arg11[%c0_52, %c0_53] : memref<8x128xf32, #tpu.memory_space<vmem>>, vector<8x128xf32>
    %cst_54 = arith.constant dense<0.000000e+00> : vector<4x128xf32>
    %197 = tpu.matmul %193, %196, %cst_54 {dimension_numbers = #tpu.dot_dimension_numbers<[1], [0], [0], [1], [0, 0, 1, 1], [], []>} : vector<4x8xf32>, vector<8x128xf32>, vector<4x128xf32> -> vector<4x128xf32>
    %198 = vector.broadcast %194 : vector<1x128xf32> to vector<4x128xf32>
    %199 = arith.addf %197, %198 : vector<4x128xf32>
    %cst_55 = arith.constant 0.000000e+00 : f32
    %200 = vector.broadcast %cst_55 : f32 to vector<4x32xf32>
    %201 = arith.negf %199 : vector<4x128xf32>
    %202 = math.exp %201 : vector<4x128xf32>
    %cst_56 = arith.constant 1.000000e+00 : f32
    %203 = vector.broadcast %cst_56 : f32 to vector<4x128xf32>
    %204 = arith.addf %203, %202 : vector<4x128xf32>
    %205 = arith.divf %203, %204 : vector<4x128xf32>
    %206 = vector.extract_strided_slice %199 {offsets = [0, 64], sizes = [4, 32], strides = [1, 1]} : vector<4x128xf32> to vector<4x32xf32>
    %207 = math.tanh %206 : vector<4x32xf32>
    %208 = vector.extract_strided_slice %205 {offsets = [0, 0], sizes = [4, 32], strides = [1, 1]} : vector<4x128xf32> to vector<4x32xf32>
    %209 = vector.extract_strided_slice %205 {offsets = [0, 32], sizes = [4, 32], strides = [1, 1]} : vector<4x128xf32> to vector<4x32xf32>
    %210 = vector.extract_strided_slice %205 {offsets = [0, 96], sizes = [4, 32], strides = [1, 1]} : vector<4x128xf32> to vector<4x32xf32>
    %211 = arith.mulf %209, %200 : vector<4x32xf32>
    %212 = arith.mulf %208, %207 : vector<4x32xf32>
    %213 = arith.addf %211, %212 : vector<4x32xf32>
    %214 = math.tanh %213 : vector<4x32xf32>
    %215 = arith.mulf %210, %214 : vector<4x32xf32>
    %216 = arith.truncf %215 : vector<4x32xf32> to vector<4x32xbf16>
    %cst_57 = arith.constant dense<0.000000e+00> : vector<4x128xf32>
    %217 = tpu.matmul %216, %195, %cst_57 {dimension_numbers = #tpu.dot_dimension_numbers<[1], [0], [0], [1], [0, 0, 1, 1], [], []>} : vector<4x32xbf16>, vector<32x128xbf16>, vector<4x128xf32> -> vector<4x128xf32>
    %218 = vector.broadcast %194 : vector<1x128xf32> to vector<4x128xf32>
    %219 = arith.addf %217, %218 : vector<4x128xf32>
    %220 = arith.negf %219 : vector<4x128xf32>
    %221 = math.exp %220 : vector<4x128xf32>
    %cst_58 = arith.constant 1.000000e+00 : f32
    %222 = vector.broadcast %cst_58 : f32 to vector<4x128xf32>
    %223 = arith.addf %222, %221 : vector<4x128xf32>
    %224 = arith.divf %222, %223 : vector<4x128xf32>
    %225 = vector.extract_strided_slice %219 {offsets = [0, 64], sizes = [4, 32], strides = [1, 1]} : vector<4x128xf32> to vector<4x32xf32>
    %226 = math.tanh %225 : vector<4x32xf32>
    %227 = vector.extract_strided_slice %224 {offsets = [0, 0], sizes = [4, 32], strides = [1, 1]} : vector<4x128xf32> to vector<4x32xf32>
    %228 = vector.extract_strided_slice %224 {offsets = [0, 32], sizes = [4, 32], strides = [1, 1]} : vector<4x128xf32> to vector<4x32xf32>
    %229 = vector.extract_strided_slice %224 {offsets = [0, 96], sizes = [4, 32], strides = [1, 1]} : vector<4x128xf32> to vector<4x32xf32>
    %230 = arith.mulf %228, %213 : vector<4x32xf32>
    %231 = arith.mulf %227, %226 : vector<4x32xf32>
    %232 = arith.addf %230, %231 : vector<4x32xf32>
    %233 = math.tanh %232 : vector<4x32xf32>
    %234 = arith.mulf %229, %233 : vector<4x32xf32>
    %235 = arith.truncf %234 : vector<4x32xf32> to vector<4x32xbf16>
    %cst_59 = arith.constant dense<0.000000e+00> : vector<4x128xf32>
    %236 = tpu.matmul %235, %195, %cst_59 {dimension_numbers = #tpu.dot_dimension_numbers<[1], [0], [0], [1], [0, 0, 1, 1], [], []>} : vector<4x32xbf16>, vector<32x128xbf16>, vector<4x128xf32> -> vector<4x128xf32>
    %237 = vector.broadcast %194 : vector<1x128xf32> to vector<4x128xf32>
    %238 = arith.addf %236, %237 : vector<4x128xf32>
    %239 = arith.negf %238 : vector<4x128xf32>
    %240 = math.exp %239 : vector<4x128xf32>
    %cst_60 = arith.constant 1.000000e+00 : f32
    %241 = vector.broadcast %cst_60 : f32 to vector<4x128xf32>
    %242 = arith.addf %241, %240 : vector<4x128xf32>
    %243 = arith.divf %241, %242 : vector<4x128xf32>
    %244 = vector.extract_strided_slice %238 {offsets = [0, 64], sizes = [4, 32], strides = [1, 1]} : vector<4x128xf32> to vector<4x32xf32>
    %245 = math.tanh %244 : vector<4x32xf32>
    %246 = vector.extract_strided_slice %243 {offsets = [0, 0], sizes = [4, 32], strides = [1, 1]} : vector<4x128xf32> to vector<4x32xf32>
    %247 = vector.extract_strided_slice %243 {offsets = [0, 32], sizes = [4, 32], strides = [1, 1]} : vector<4x128xf32> to vector<4x32xf32>
    %248 = vector.extract_strided_slice %243 {offsets = [0, 96], sizes = [4, 32], strides = [1, 1]} : vector<4x128xf32> to vector<4x32xf32>
    %249 = arith.mulf %247, %232 : vector<4x32xf32>
    %250 = arith.mulf %246, %245 : vector<4x32xf32>
    %251 = arith.addf %249, %250 : vector<4x32xf32>
    %252 = math.tanh %251 : vector<4x32xf32>
    %253 = arith.mulf %248, %252 : vector<4x32xf32>
    %254 = arith.truncf %253 : vector<4x32xf32> to vector<4x32xbf16>
    %cst_61 = arith.constant dense<0.000000e+00> : vector<4x128xf32>
    %255 = tpu.matmul %254, %195, %cst_61 {dimension_numbers = #tpu.dot_dimension_numbers<[1], [0], [0], [1], [0, 0, 1, 1], [], []>} : vector<4x32xbf16>, vector<32x128xbf16>, vector<4x128xf32> -> vector<4x128xf32>
    %256 = vector.broadcast %194 : vector<1x128xf32> to vector<4x128xf32>
    %257 = arith.addf %255, %256 : vector<4x128xf32>
    %258 = arith.negf %257 : vector<4x128xf32>
    %259 = math.exp %258 : vector<4x128xf32>
    %cst_62 = arith.constant 1.000000e+00 : f32
    %260 = vector.broadcast %cst_62 : f32 to vector<4x128xf32>
    %261 = arith.addf %260, %259 : vector<4x128xf32>
    %262 = arith.divf %260, %261 : vector<4x128xf32>
    %263 = vector.extract_strided_slice %257 {offsets = [0, 64], sizes = [4, 32], strides = [1, 1]} : vector<4x128xf32> to vector<4x32xf32>
    %264 = math.tanh %263 : vector<4x32xf32>
    %265 = vector.extract_strided_slice %262 {offsets = [0, 0], sizes = [4, 32], strides = [1, 1]} : vector<4x128xf32> to vector<4x32xf32>
    %266 = vector.extract_strided_slice %262 {offsets = [0, 32], sizes = [4, 32], strides = [1, 1]} : vector<4x128xf32> to vector<4x32xf32>
    %267 = vector.extract_strided_slice %262 {offsets = [0, 96], sizes = [4, 32], strides = [1, 1]} : vector<4x128xf32> to vector<4x32xf32>
    %268 = arith.mulf %266, %251 : vector<4x32xf32>
    %269 = arith.mulf %265, %264 : vector<4x32xf32>
    %270 = arith.addf %268, %269 : vector<4x32xf32>
    %271 = math.tanh %270 : vector<4x32xf32>
    %272 = arith.mulf %267, %271 : vector<4x32xf32>
    %273 = arith.truncf %272 : vector<4x32xf32> to vector<4x32xbf16>
    %cst_63 = arith.constant dense<0.000000e+00> : vector<4x128xf32>
    %274 = tpu.matmul %273, %195, %cst_63 {dimension_numbers = #tpu.dot_dimension_numbers<[1], [0], [0], [1], [0, 0, 1, 1], [], []>} : vector<4x32xbf16>, vector<32x128xbf16>, vector<4x128xf32> -> vector<4x128xf32>
    %275 = vector.broadcast %194 : vector<1x128xf32> to vector<4x128xf32>
    %276 = arith.addf %274, %275 : vector<4x128xf32>
    %277 = arith.negf %276 : vector<4x128xf32>
    %278 = math.exp %277 : vector<4x128xf32>
    %cst_64 = arith.constant 1.000000e+00 : f32
    %279 = vector.broadcast %cst_64 : f32 to vector<4x128xf32>
    %280 = arith.addf %279, %278 : vector<4x128xf32>
    %281 = arith.divf %279, %280 : vector<4x128xf32>
    %282 = vector.extract_strided_slice %276 {offsets = [0, 64], sizes = [4, 32], strides = [1, 1]} : vector<4x128xf32> to vector<4x32xf32>
    %283 = math.tanh %282 : vector<4x32xf32>
    %284 = vector.extract_strided_slice %281 {offsets = [0, 0], sizes = [4, 32], strides = [1, 1]} : vector<4x128xf32> to vector<4x32xf32>
    %285 = vector.extract_strided_slice %281 {offsets = [0, 32], sizes = [4, 32], strides = [1, 1]} : vector<4x128xf32> to vector<4x32xf32>
    %286 = vector.extract_strided_slice %281 {offsets = [0, 96], sizes = [4, 32], strides = [1, 1]} : vector<4x128xf32> to vector<4x32xf32>
    %287 = arith.mulf %285, %270 : vector<4x32xf32>
    %288 = arith.mulf %284, %283 : vector<4x32xf32>
    %289 = arith.addf %287, %288 : vector<4x32xf32>
    %290 = math.tanh %289 : vector<4x32xf32>
    %291 = arith.mulf %286, %290 : vector<4x32xf32>
    %292 = arith.truncf %291 : vector<4x32xf32> to vector<4x32xbf16>
    %cst_65 = arith.constant dense<0.000000e+00> : vector<4x128xf32>
    %293 = tpu.matmul %292, %195, %cst_65 {dimension_numbers = #tpu.dot_dimension_numbers<[1], [0], [0], [1], [0, 0, 1, 1], [], []>} : vector<4x32xbf16>, vector<32x128xbf16>, vector<4x128xf32> -> vector<4x128xf32>
    %294 = vector.broadcast %194 : vector<1x128xf32> to vector<4x128xf32>
    %295 = arith.addf %293, %294 : vector<4x128xf32>
    %296 = arith.negf %295 : vector<4x128xf32>
    %297 = math.exp %296 : vector<4x128xf32>
    %cst_66 = arith.constant 1.000000e+00 : f32
    %298 = vector.broadcast %cst_66 : f32 to vector<4x128xf32>
    %299 = arith.addf %298, %297 : vector<4x128xf32>
    %300 = arith.divf %298, %299 : vector<4x128xf32>
    %301 = vector.extract_strided_slice %295 {offsets = [0, 64], sizes = [4, 32], strides = [1, 1]} : vector<4x128xf32> to vector<4x32xf32>
    %302 = math.tanh %301 : vector<4x32xf32>
    %303 = vector.extract_strided_slice %300 {offsets = [0, 0], sizes = [4, 32], strides = [1, 1]} : vector<4x128xf32> to vector<4x32xf32>
    %304 = vector.extract_strided_slice %300 {offsets = [0, 32], sizes = [4, 32], strides = [1, 1]} : vector<4x128xf32> to vector<4x32xf32>
    %305 = vector.extract_strided_slice %300 {offsets = [0, 96], sizes = [4, 32], strides = [1, 1]} : vector<4x128xf32> to vector<4x32xf32>
    %306 = arith.mulf %304, %289 : vector<4x32xf32>
    %307 = arith.mulf %303, %302 : vector<4x32xf32>
    %308 = arith.addf %306, %307 : vector<4x32xf32>
    %309 = math.tanh %308 : vector<4x32xf32>
    %310 = arith.mulf %305, %309 : vector<4x32xf32>
    %311 = arith.truncf %310 : vector<4x32xf32> to vector<4x32xbf16>
    %cst_67 = arith.constant dense<0.000000e+00> : vector<4x128xf32>
    %312 = tpu.matmul %311, %195, %cst_67 {dimension_numbers = #tpu.dot_dimension_numbers<[1], [0], [0], [1], [0, 0, 1, 1], [], []>} : vector<4x32xbf16>, vector<32x128xbf16>, vector<4x128xf32> -> vector<4x128xf32>
    %313 = vector.broadcast %194 : vector<1x128xf32> to vector<4x128xf32>
    %314 = arith.addf %312, %313 : vector<4x128xf32>
    %315 = arith.negf %314 : vector<4x128xf32>
    %316 = math.exp %315 : vector<4x128xf32>
    %cst_68 = arith.constant 1.000000e+00 : f32
    %317 = vector.broadcast %cst_68 : f32 to vector<4x128xf32>
    %318 = arith.addf %317, %316 : vector<4x128xf32>
    %319 = arith.divf %317, %318 : vector<4x128xf32>
    %320 = vector.extract_strided_slice %314 {offsets = [0, 64], sizes = [4, 32], strides = [1, 1]} : vector<4x128xf32> to vector<4x32xf32>
    %321 = math.tanh %320 : vector<4x32xf32>
    %322 = vector.extract_strided_slice %319 {offsets = [0, 0], sizes = [4, 32], strides = [1, 1]} : vector<4x128xf32> to vector<4x32xf32>
    %323 = vector.extract_strided_slice %319 {offsets = [0, 32], sizes = [4, 32], strides = [1, 1]} : vector<4x128xf32> to vector<4x32xf32>
    %324 = vector.extract_strided_slice %319 {offsets = [0, 96], sizes = [4, 32], strides = [1, 1]} : vector<4x128xf32> to vector<4x32xf32>
    %325 = arith.mulf %323, %308 : vector<4x32xf32>
    %326 = arith.mulf %322, %321 : vector<4x32xf32>
    %327 = arith.addf %325, %326 : vector<4x32xf32>
    %328 = math.tanh %327 : vector<4x32xf32>
    %329 = arith.mulf %324, %328 : vector<4x32xf32>
    %330 = arith.truncf %329 : vector<4x32xf32> to vector<4x32xbf16>
    %cst_69 = arith.constant dense<0.000000e+00> : vector<4x128xf32>
    %331 = tpu.matmul %330, %195, %cst_69 {dimension_numbers = #tpu.dot_dimension_numbers<[1], [0], [0], [1], [0, 0, 1, 1], [], []>} : vector<4x32xbf16>, vector<32x128xbf16>, vector<4x128xf32> -> vector<4x128xf32>
    %332 = vector.broadcast %194 : vector<1x128xf32> to vector<4x128xf32>
    %333 = arith.addf %331, %332 : vector<4x128xf32>
    %334 = arith.negf %333 : vector<4x128xf32>
    %335 = math.exp %334 : vector<4x128xf32>
    %cst_70 = arith.constant 1.000000e+00 : f32
    %336 = vector.broadcast %cst_70 : f32 to vector<4x128xf32>
    %337 = arith.addf %336, %335 : vector<4x128xf32>
    %338 = arith.divf %336, %337 : vector<4x128xf32>
    %339 = vector.extract_strided_slice %333 {offsets = [0, 64], sizes = [4, 32], strides = [1, 1]} : vector<4x128xf32> to vector<4x32xf32>
    %340 = math.tanh %339 : vector<4x32xf32>
    %341 = vector.extract_strided_slice %338 {offsets = [0, 0], sizes = [4, 32], strides = [1, 1]} : vector<4x128xf32> to vector<4x32xf32>
    %342 = vector.extract_strided_slice %338 {offsets = [0, 32], sizes = [4, 32], strides = [1, 1]} : vector<4x128xf32> to vector<4x32xf32>
    %343 = vector.extract_strided_slice %338 {offsets = [0, 96], sizes = [4, 32], strides = [1, 1]} : vector<4x128xf32> to vector<4x32xf32>
    %344 = arith.mulf %342, %327 : vector<4x32xf32>
    %345 = arith.mulf %341, %340 : vector<4x32xf32>
    %346 = arith.addf %344, %345 : vector<4x32xf32>
    %347 = math.tanh %346 : vector<4x32xf32>
    %348 = arith.mulf %343, %347 : vector<4x32xf32>
    %349 = tpu.concatenate %215, %234, %253, %272, %291, %310, %329, %348 in 1 : vector<4x32xf32>, vector<4x32xf32>, vector<4x32xf32>, vector<4x32xf32>, vector<4x32xf32>, vector<4x32xf32>, vector<4x32xf32>, vector<4x32xf32> -> vector<4x256xf32>
    %c0_71 = arith.constant 0 : index
    %c0_72 = arith.constant 0 : index
    %350 = vector.load %arg14[%c0_71, %c0_72] : memref<256x32xf32, #tpu.memory_space<vmem>>, vector<256x32xf32>
    %cst_73 = arith.constant dense<0.000000e+00> : vector<4x32xf32>
    %351 = tpu.matmul %349, %350, %cst_73 {dimension_numbers = #tpu.dot_dimension_numbers<[1], [0], [0], [1], [0, 0, 1, 1], [], []>} : vector<4x256xf32>, vector<256x32xf32>, vector<4x32xf32> -> vector<4x32xf32>
    %c0_74 = arith.constant 0 : index
    %c0_75 = arith.constant 0 : index
    %352 = vector.load %arg15[%c0_74, %c0_75] : memref<1x32xf32, #tpu.memory_space<vmem>>, vector<1x32xf32>
    %353 = vector.broadcast %352 : vector<1x32xf32> to vector<4x32xf32>
    %354 = arith.addf %351, %353 : vector<4x32xf32>
    %c0_76 = arith.constant 0 : index
    %c0_77 = arith.constant 0 : index
    %355 = vector.load %arg16[%c0_76, %c0_77] : memref<8x128xf32, #tpu.memory_space<vmem>>, vector<4x32xf32>
    tpu.vector_store %arg16[%c0_76, %c0_77], %354 {strides = array<i32>} : memref<8x128xf32, #tpu.memory_space<vmem>>, vector<4x32xf32>,
    return
  }
}

</mosaic_0001>

<bundles_post_ra>
// kernel: vambc_forward.1
= control target key start
LH: loop header
LB: loop body
LE: loop exit
PB: predicated region body
PF: predicated region fallthrough
CT: control target
= control target key end

     0   :  { %vm105_vm0 = vcmask 261120   ;;  %s1681_s19 = smov 64   ;;  %s1685_s28 = smov 44   ;;  %s2273_s2 = inlined_call_operand.vmem [shape: f32[32,1024], index: 2, kind: input, shape index: {}]   ;;  %s2274_s0 = inlined_call_operand.vmem [shape: f32[2,32], index: 0, kind: input, shape index: {}]   ;;  %s2275_s3 = inlined_call_operand.vmem [shape: f32[1,1024], index: 3, kind: input, shape index: {}]   ;;  %s2276_s4 = inlined_call_operand.vmem [shape: bf16[32,128], index: 4, kind: input, shape index: {}]   ;;  %s2277_s5 = inlined_call_operand.vmem [shape: f32[32,4], index: 5, kind: input, shape index: {}]   ;;  %s2278_s6 = inlined_call_operand.vmem [shape: f32[1,4], index: 6, kind: input, shape index: {}]   ;;  %s2279_s7 = inlined_call_operand.vmem [shape: f32[32,8], index: 7, kind: input, shape index: {}]   ;;  %s2280_s8 = inlined_call_operand.vmem [shape: f32[1,8], index: 8, kind: input, shape index: {}]   ;;  %s2281_s1 = inlined_call_operand.vmem [shape: f32[2,4], index: 1, kind: input, shape index: {}]   ;;  %s2282_s9 = inlined_call_operand.vmem [shape: f32[4,8], index: 9, kind: input, shape index: {}]   ;;  %s2283_s10 = inlined_call_operand.vmem [shape: f32[1,8], index: 10, kind: input, shape index: {}]   ;;  %s2284_s11 = inlined_call_operand.vmem [shape: f32[8,128], index: 11, kind: input, shape index: {}]   ;;  %s2285_s12 = inlined_call_operand.vmem [shape: f32[1,128], index: 12, kind: input, shape index: {}]   ;;  %s2286_s13 = inlined_call_operand.vmem [shape: bf16[32,128], index: 13, kind: input, shape index: {}]   ;;  %s2287_s16 = inlined_call_operand.vmem [shape: f32[8,128], index: 16, kind: output, shape index: {}]   ;;  %s2288_s14 = inlined_call_operand.vmem [shape: f32[256,32], index: 14, kind: input, shape index: {}]   ;;  %s2289_s15 = inlined_call_operand.vmem [shape: f32[1,32], index: 15, kind: input, shape index: {}]  }
   0x1   :  { %2291 = sst [smem:[#allocation2_spill]] %s2273_s2  ;;  %v1787_v4 = vld [vmem:[%s2274_s0] sm:$0x3]  ;;  %s1682_s0 = smov 32   ;;  %v1827_v36 = vld [vmem:[%s2276_s4 + $0x8] sm:$0xff] }
   0x2   :  { %s2292_s23 = sld [smem:[#allocation2_spill]]  ;;  %v1794_v5 = vld [vmem:[%s2275_s3] sm:$0xff]  ;;  %s1686_s18 = smov 36  }
   0x3   :  { %v89_v6 = vperm.slane %v1794_v5, 0  ;;  %v1838_v38 = vld [vmem:[%s2276_s4] sm:$0xff]  ;;  %v90_v44 = vperm.slane %v1794_v5, 1 }
   0x8   :  { %v79_v0 = vld [vmem:[%s2292_s23 + $0xc0] sm:$0xff]  ;;  %v80_v31 = vld [vmem:[%s2292_s23 + $0xc8] sm:$0xff] }
   0x9   :  { %v71_v1 = vld [vmem:[%s2292_s23 + $0x80] sm:$0xff]  ;;  %121 = vmatpush.msra.mxu0 %v79_v0  ;;  %141 = vmatpush.msra.mxu1 %v80_v31  ;;  %v72_v33 = vld [vmem:[%s2292_s23 + $0x88] sm:$0xff] }
   0xa   :  { %v63_v2 = vld [vmem:[%s2292_s23 + $0x40] sm:$0xff]  ;;  %v64_v34 = vld [vmem:[%s2292_s23 + $0x48] sm:$0xff] }
   0xb   :  { %122 = vmatpush.msra.mxu0 %v71_v1  ;;  %v55_v3 = vld [vmem:[%s2292_s23] sm:$0xff]  ;;  %142 = vmatpush.msra.mxu1 %v72_v33  ;;  %v56_v37 = vld [vmem:[%s2292_s23 + $0x8] sm:$0xff] }
   0xc   :  { %v83_v29 = vld [vmem:[%s2292_s23 + $0xe0] sm:$0xff] }
   0xd   :  { %123 = vmatpush.msra.mxu0 %v63_v2  ;;  %v75_v30 = vld [vmem:[%s2292_s23 + $0xa0] sm:$0xff]  ;;  %143 = vmatpush.msra.mxu1 %v64_v34 }
   0xe   :  { %v67_v32 = vld [vmem:[%s2292_s23 + $0x60] sm:$0xff] }
   0xf   :  { %124 = vmatpush.msra.mxu0 %v55_v3  ;;  %v59_v35 = vld [vmem:[%s2292_s23 + $0x20] sm:$0xff]  ;;  %144 = vmatpush.msra.mxu1 %v56_v37 }
  0x10   :  { %1468 = vmatmul.msk.f32.vlgmr.msra.gmra.mxu0 %vm105_vm0, %v1787_v4  ;;  %1469 = vmatmul.msk.f32.vlgmr.msra.gmra.mxu1 %vm105_vm0, %v1787_v4 }
  0x11   :  { %201 = vmatpush.msrb.mxu0 %v83_v29 }
  0x13   :  { %202 = vmatpush.msrb.mxu0 %v75_v30 }
  0x15   :  { %203 = vmatpush.msrb.mxu0 %v67_v32 }
  0x17   :  { %204 = vmatpush.msrb.mxu0 %v59_v35 }
  0x18   :  { %1472 = vmatmul.msk.f32.vlgmr.msrb.gmra.mxu0 %vm105_vm0, %v1787_v4 }
  0x19   :  { %335 = vmatpush.bf16.msra.mxu0 %v1827_v36 }
  0x1d   :  { %336 = vmatpush.bf16.msra.mxu0 %v1838_v38 }
  0x21   :  { %567 = vmatpush.bf16.msrb.mxu0 %v1827_v36 }
  0x25   :  { %568 = vmatpush.bf16.msrb.mxu0 %v1838_v38 }
  0x8d   :  { %v126_v7 = vpop.f32.mrf.mxu0  ;;  %v146_v45 = vpop.f32.mrf.mxu1 }
  0x8e   :  { %v127_v8 = vadd.f32 %v126_v7, %v89_v6  ;;  %v147_v46 = vadd.f32 %v146_v45, %v90_v44 }
  0x90   :  { %1553 = vtanh.f32 %v127_v8  ;;  %v1476_v10 = vmul.f32 -1.442695, %v127_v8  ;;  %v84_v8 = vld [vmem:[%s2292_s23 + $0xe8] sm:$0xff] }
  0x91   :  { %221 = vmatpush.msrb.mxu1 %v84_v8 }
  0x92   :  { %1555 = vpow2.f32 %v1476_v10  ;;  %v76_v10 = vld [vmem:[%s2292_s23 + $0xa8] sm:$0xff] }
  0x93   :  { %222 = vmatpush.msrb.mxu1 %v76_v10 }
  0x95   :  { %v1847_v43 = vpop.f32.mrf.mxu0 }
  0x96   :  { %v1554_v9 = vpop.eup %1553 }
  0x97   :  { %295 = vrot.lane.b32.xlu0 %v1554_v9, %s1681_s19  ;;  %v81_v9 = vld [vmem:[%s2292_s23 + $0xd0] sm:$0xff] }
  0x98   :  { %v1556_v11 = vpop.eup %1555  ;;  %161 = vmatpush.msra.mxu3 %v81_v9 }
  0x99   :  { %v276_v12 = vadd.f32 1.0, %v1556_v11  ;;  %v73_v11 = vld [vmem:[%s2292_s23 + $0x90] sm:$0xff] }
  0x9a   :  { %162 = vmatpush.msra.mxu3 %v73_v11 }
  0x9b   :  { %1557 = vrcp.f32 %v276_v12  ;;  %v288_v18 = vand.u32 2147483648, %v276_v12  ;;  %vm282_vm2 = vweird.f32 %v276_v12  ;;  %v286_v19 = vand.u32 2147483647, %v276_v12 }
  0x9d   :  { %v289_v21 = vor.u32 1.1754944e-38, %v288_v18  ;;  %vm287_vm4 = vcmp.eq.f32.partialorder %v286_v19, 8.507059e+37 }
  0xa1   :  { %v1558_v13 = vpop.eup %1557 }
  0xa2   :  { %v278_v14 = vmul.f32 %v1558_v13, %v276_v12  ;;  %vm283_vm1 = vweird.f32 %v1558_v13  ;;  %v68_v12 = vld [vmem:[%s2292_s23 + $0x68] sm:$0xff] }
  0xa3   :  { %vm284_vm3 = vmor %vm282_vm2, %vm283_vm1  ;;  %223 = vmatpush.msrb.mxu1 %v68_v12 }
  0xa4   :  { %v279_v15 = vsub.f32 1.0, %v278_v14  ;;  %v60_v14 = vld [vmem:[%s2292_s23 + $0x28] sm:$0xff] }
  0xa5   :  { %224 = vmatpush.msrb.mxu1 %v60_v14 }
  0xa6   :  { %v280_v16 = vmul.f32 %v1558_v13, %v279_v15  ;;  %v57_v15 = vld [vmem:[%s2292_s23 + $0x10] sm:$0xff]  ;;  %1473 = vmatmul.msk.f32.vlgmr.msrb.gmra.mxu1 %vm105_vm0, %v1787_v4 }
  0xa7   :  { %393 = vmatpush.bf16.msra.mxu1 %v1827_v36 }
  0xa8   :  { %v281_v17 = vadd.f32 %v1558_v13, %v280_v16 }
  0xaa   :  { %v285_v20 = vsel %vm284_vm3, %v1558_v13, %v281_v17  ;;  %v65_v13 = vld [vmem:[%s2292_s23 + $0x50] sm:$0xff] }
  0xab   :  { %v290_v23 = vsel %vm287_vm4, %v289_v21, %v285_v20  ;;  %163 = vmatpush.msra.mxu3 %v65_v13  ;;  %394 = vmatpush.bf16.msra.mxu1 %v1838_v38  ;;  %v91_v21 = vperm.slane %v1794_v5, 2 }
  0xac   :  { %v293_v25 = vmul.f32 0.0, %v290_v23 }
  0xad   :  { %164 = vmatpush.msra.mxu3 %v57_v15 }
  0xae   :  { %1470 = vmatmul.msk.f32.vlgmr.msra.gmra.mxu3 %vm105_vm0, %v1787_v4 }
  0xaf   :  { %625 = vmatpush.bf16.msrb.mxu1 %v1827_v36 }
  0xb3   :  { %626 = vmatpush.bf16.msrb.mxu1 %v1838_v38 }
 0x109   :  { %v296_v22 = vpop.permute.xlu0 %295 }
 0x10a   :  { %v298_v24 = vmul.f32 %v296_v22, %v290_v23 }
 0x10c   :  { %300 = vrot.lane.b32.xlu0 %v298_v24, %s1682_s0 }
 0x123   :  { %v1891_v20 = vpop.f32.mrf.mxu1 }
 0x131   :  { %v166_v22 = vpop.f32.mrf.mxu3 }
 0x17e   :  { %v301_v26 = vpop.permute.xlu0 %300 }
 0x17f   :  { %v1799_v27 = vadd.f32 %v301_v26, %v293_v25 }
 0x181   :  { %1559 = vtanh.f32 %v1799_v27 }
 0x187   :  { %v1560_v28 = vpop.eup %1559 }
 0x188   :  { %306 = vrot.lane.b32.xlu1 %v1560_v28, %s1681_s19 }
 0x1fa   :  { %v307_v39 = vpop.permute.xlu1 %306 }
 0x1fb   :  { %v309_v40 = vmul.f32 %v307_v39, %v290_v23  ;;  %v167_v23 = vadd.f32 %v166_v22, %v91_v21 }
 0x1fd   :  { %v310_v41 = vpack.c.bf16 %v309_v40, %v309_v40 }
 0x1ff   :  { %312 = vrot.lane.b32.xlu1 %v310_v41, %s1682_s0 }
 0x271   :  { %v313_v42 = vpop.permute.xlu1 %312 }
 0x272   :  { %1485 = vmatmul.msk.bf16.vlgmr.msra.gmra.mxu0 %vm105_vm0, %v313_v42 }
 0x2ef   :  { %v338_v47 = vpop.f32.mrf.mxu0 }
 0x2f0   :  { %v342_v48 = vadd.f32 %v338_v47, %v147_v46 }
 0x2f2   :  { %1561 = vtanh.f32 %v342_v48  ;;  %v1486_v51 = vmul.f32 -1.442695, %v342_v48 }
 0x2f4   :  { %1563 = vpow2.f32 %v1486_v51  ;;  %v77_v51 = vld [vmem:[%s2292_s23 + $0xb0] sm:$0xff] }
 0x2f7   :  { %v340_v49 = vpop.f32.mrf.mxu0 }
 0x2f8   :  { %v1562_v50 = vpop.eup %1561 }
 0x2f9   :  { %365 = vrot.lane.b32.xlu2 %v1562_v50, %s1681_s19  ;;  %v85_v50 = vld [vmem:[%s2292_s23 + $0xf0] sm:$0xff] }
 0x2fa   :  { %v1564_v52 = vpop.eup %1563  ;;  %241 = vmatpush.msra.mxu2 %v85_v50 }
 0x2fb   :  { %v346_v53 = vadd.f32 1.0, %v1564_v52  ;;  %v82_v52 = vld [vmem:[%s2292_s23 + $0xd8] sm:$0xff] }
 0x2fc   :  { %181 = vmatpush.msrb.mxu3 %v82_v52  ;;  %242 = vmatpush.msra.mxu2 %v77_v51 }
 0x2fd   :  { %1565 = vrcp.f32 %v346_v53  ;;  %v358_v59 = vand.u32 2147483648, %v346_v53  ;;  %vm352_vm6 = vweird.f32 %v346_v53  ;;  %v356_v60 = vand.u32 2147483647, %v346_v53 }
 0x2ff   :  { %v359_v62 = vor.u32 1.1754944e-38, %v358_v59  ;;  %vm357_vm8 = vcmp.eq.f32.partialorder %v356_v60, 8.507059e+37 }
 0x303   :  { %v1566_v54 = vpop.eup %1565 }
 0x304   :  { %v348_v55 = vmul.f32 %v1566_v54, %v346_v53  ;;  %vm353_vm5 = vweird.f32 %v1566_v54  ;;  %v74_v53 = vld [vmem:[%s2292_s23 + $0x98] sm:$0xff] }
 0x305   :  { %vm354_vm7 = vmor %vm352_vm6, %vm353_vm5  ;;  %182 = vmatpush.msrb.mxu3 %v74_v53 }
 0x306   :  { %v349_v56 = vsub.f32 1.0, %v348_v55  ;;  %v66_v55 = vld [vmem:[%s2292_s23 + $0x58] sm:$0xff] }
 0x307   :  { %183 = vmatpush.msrb.mxu3 %v66_v55 }
 0x308   :  { %v350_v57 = vmul.f32 %v1566_v54, %v349_v56  ;;  %v61_v56 = vld [vmem:[%s2292_s23 + $0x30] sm:$0xff] }
 0x30a   :  { %v351_v58 = vadd.f32 %v1566_v54, %v350_v57  ;;  %v58_v57 = vld [vmem:[%s2292_s23 + $0x18] sm:$0xff] }
 0x30b   :  { %184 = vmatpush.msrb.mxu3 %v58_v57 }
 0x30c   :  { %v355_v61 = vsel %vm354_vm7, %v1566_v54, %v351_v58  ;;  %v69_v54 = vld [vmem:[%s2292_s23 + $0x70] sm:$0xff]  ;;  %1471 = vmatmul.msk.f32.vlgmr.msrb.gmra.mxu3 %vm105_vm0, %v1787_v4 }
 0x30d   :  { %v360_v0 = vsel %vm357_vm8, %v359_v62, %v355_v61  ;;  %243 = vmatpush.msra.mxu2 %v69_v54 }
 0x30e   :  { %v363_v2 = vmul.f32 %v360_v0, %v1799_v27 }
 0x30f   :  { %244 = vmatpush.msra.mxu2 %v61_v56 }
 0x310   :  { %1474 = vmatmul.msk.f32.vlgmr.msra.gmra.mxu2 %vm105_vm0, %v1787_v4 }
 0x311   :  { %451 = vmatpush.bf16.msrb.mxu2 %v1827_v36 }
 0x315   :  { %452 = vmatpush.bf16.msrb.mxu2 %v1838_v38 }
 0x319   :  { %683 = vmatpush.bf16.msra.mxu2 %v1827_v36 }
 0x31d   :  { %684 = vmatpush.bf16.msra.mxu2 %v1838_v38 }
 0x353   :  { %v366_v63 = vpop.permute.xlu2 %365 }
 0x354   :  { %v368_v1 = vmul.f32 %v366_v63, %v360_v0  ;;  %v92_v63 = vperm.slane %v1794_v5, 3 }
 0x356   :  { %370 = vrot.lane.b32.xlu2 %v368_v1, %s1682_s0 }
 0x393   :  { %v1935_v62 = vpop.f32.mrf.mxu2 }
 0x3b0   :  { %v371_v3 = vpop.permute.xlu2 %370 }
 0x3b1   :  { %v1853_v6 = vadd.f32 %v371_v3, %v363_v2 }
 0x3b3   :  { %1567 = vtanh.f32 %v1853_v6 }
 0x3b9   :  { %v1568_v7 = vpop.eup %1567 }
 0x3ba   :  { %376 = vrot.lane.b32.xlu0 %v1568_v7, %s1681_s19 }
 0x42c   :  { %v377_v16 = vpop.permute.xlu0 %376 }
 0x42d   :  { %v379_v17 = vmul.f32 %v377_v16, %v360_v0  ;;  %v186_v0 = vpop.f32.mrf.mxu3 }
 0x42e   :  { %v187_v1 = vadd.f32 %v186_v0, %v92_v63 }
 0x42f   :  { %v380_v18 = vpack.c.bf16 %v379_v17, %v379_v17 }
 0x431   :  { %382 = vrot.lane.b32.xlu1 %v380_v18, %s1682_s0 }
 0x4a3   :  { %v383_v19 = vpop.permute.xlu1 %382 }
 0x4a4   :  { %1487 = vmatmul.msk.bf16.vlgmr.msra.gmra.mxu1 %vm105_vm0, %v383_v19 }
 0x521   :  { %v396_v24 = vpop.f32.mrf.mxu1 }
 0x522   :  { %v400_v25 = vadd.f32 %v396_v24, %v167_v23 }
 0x524   :  { %1569 = vtanh.f32 %v400_v25  ;;  %v1488_v28 = vmul.f32 -1.442695, %v400_v25 }
 0x526   :  { %1571 = vpow2.f32 %v1488_v28  ;;  %v86_v28 = vld [vmem:[%s2292_s23 + $0xf8] sm:$0xff] }
 0x527   :  { %261 = vmatpush.msra.mxu3 %v86_v28 }
 0x529   :  { %v398_v26 = vpop.f32.mrf.mxu1 }
 0x52a   :  { %v1570_v27 = vpop.eup %1569 }
 0x52b   :  { %423 = vrot.lane.b32.xlu2 %v1570_v27, %s1681_s19 }
 0x52c   :  { %v1572_v29 = vpop.eup %1571 }
 0x52d   :  { %v404_v30 = vadd.f32 1.0, %v1572_v29  ;;  %v78_v29 = vld [vmem:[%s2292_s23 + $0xb8] sm:$0xff] }
 0x52e   :  { %262 = vmatpush.msra.mxu3 %v78_v29 }
 0x52f   :  { %1573 = vrcp.f32 %v404_v30  ;;  %v416_v37 = vand.u32 2147483648, %v404_v30  ;;  %vm410_vm10 = vweird.f32 %v404_v30  ;;  %v414_v39 = vand.u32 2147483647, %v404_v30 }
 0x531   :  { %v417_v41 = vor.u32 1.1754944e-38, %v416_v37  ;;  %vm415_vm12 = vcmp.eq.f32.partialorder %v414_v39, 8.507059e+37  ;;  %v93_v39 = vperm.slane %v1794_v5, 4 }
 0x535   :  { %v1574_v31 = vpop.eup %1573 }
 0x536   :  { %v406_v32 = vmul.f32 %v1574_v31, %v404_v30  ;;  %vm411_vm9 = vweird.f32 %v1574_v31  ;;  %v70_v30 = vld [vmem:[%s2292_s23 + $0x78] sm:$0xff] }
 0x537   :  { %vm412_vm11 = vmor %vm410_vm10, %vm411_vm9  ;;  %263 = vmatpush.msra.mxu3 %v70_v30 }
 0x538   :  { %v407_v33 = vsub.f32 1.0, %v406_v32 }
 0x53a   :  { %v408_v34 = vmul.f32 %v1574_v31, %v407_v33 }
 0x53c   :  { %v409_v35 = vadd.f32 %v1574_v31, %v408_v34 }
 0x53e   :  { %v413_v40 = vsel %vm412_vm11, %v1574_v31, %v409_v35  ;;  %v62_v31 = vld [vmem:[%s2292_s23 + $0x38] sm:$0xff] }
 0x53f   :  { %v418_v44 = vsel %vm415_vm12, %v417_v41, %v413_v40  ;;  %264 = vmatpush.msra.mxu3 %v62_v31  ;;  %v207_v40 = vadd.f32 %v1847_v43, %v93_v39 }
 0x540   :  { %v421_v46 = vmul.f32 %v418_v44, %v1853_v6  ;;  %1475 = vmatmul.msk.f32.vlgmr.msra.gmra.mxu3 %vm105_vm0, %v1787_v4 }
 0x541   :  { %509 = vmatpush.bf16.msrb.mxu3 %v1827_v36 }
 0x545   :  { %510 = vmatpush.bf16.msrb.mxu3 %v1838_v38 }
 0x585   :  { %v424_v42 = vpop.permute.xlu2 %423 }
 0x586   :  { %v426_v45 = vmul.f32 %v424_v42, %v418_v44 }
 0x588   :  { %428 = vrot.lane.b32.xlu0 %v426_v45, %s1682_s0 }
 0x5c3   :  { %v1960_v37 = vpop.f32.mrf.mxu3 }
 0x5fa   :  { %v429_v47 = vpop.permute.xlu0 %428 }
 0x5fb   :  { %v1897_v48 = vadd.f32 %v429_v47, %v421_v46 }
 0x5fd   :  { %1575 = vtanh.f32 %v1897_v48 }
 0x603   :  { %v1576_v49 = vpop.eup %1575 }
 0x604   :  { %434 = vrot.lane.b32.xlu1 %v1576_v49, %s1681_s19 }
 0x676   :  { %v435_v58 = vpop.permute.xlu1 %434 }
 0x677   :  { %v437_v59 = vmul.f32 %v435_v58, %v418_v44 }
 0x679   :  { %v438_v60 = vpack.c.bf16 %v437_v59, %v437_v59 }
 0x67b   :  { %440 = vrot.lane.b32.xlu2 %v438_v60, %s1682_s0 }
 0x6d5   :  { %v441_v61 = vpop.permute.xlu2 %440 }
 0x6d6   :  { %1489 = vmatmul.msk.bf16.vlgmr.msrb.gmra.mxu2 %vm105_vm0, %v441_v61 }
 0x759   :  { %v454_v2 = vpop.f32.mrf.mxu2 }
 0x75a   :  { %v458_v3 = vadd.f32 %v454_v2, %v187_v1  ;;  %v94_v2 = vperm.slane %v1794_v5, 5 }
 0x75c   :  { %1577 = vtanh.f32 %v458_v3  ;;  %v1490_v8 = vmul.f32 -1.442695, %v458_v3  ;;  %v227_v3 = vadd.f32 %v1891_v20, %v94_v2 }
 0x75e   :  { %1579 = vpow2.f32 %v1490_v8 }
 0x761   :  { %v456_v6 = vpop.f32.mrf.mxu2 }
 0x762   :  { %v1578_v7 = vpop.eup %1577 }
 0x763   :  { %481 = vrot.lane.b32.xlu0 %v1578_v7, %s1681_s19 }
 0x764   :  { %v1580_v9 = vpop.eup %1579 }
 0x765   :  { %v462_v10 = vadd.f32 1.0, %v1580_v9 }
 0x767   :  { %1581 = vrcp.f32 %v462_v10  ;;  %v474_v16 = vand.u32 2147483648, %v462_v10  ;;  %vm468_vm14 = vweird.f32 %v462_v10  ;;  %v472_v17 = vand.u32 2147483647, %v462_v10 }
 0x769   :  { %v475_v19 = vor.u32 1.1754944e-38, %v474_v16  ;;  %vm473_vm1 = vcmp.eq.f32.partialorder %v472_v17, 8.507059e+37 }
 0x76d   :  { %v1582_v11 = vpop.eup %1581 }
 0x76e   :  { %v464_v12 = vmul.f32 %v1582_v11, %v462_v10  ;;  %vm469_vm13 = vweird.f32 %v1582_v11 }
 0x76f   :  { %vm470_vm15 = vmor %vm468_vm14, %vm469_vm13 }
 0x770   :  { %v465_v13 = vsub.f32 1.0, %v464_v12 }
 0x772   :  { %v466_v14 = vmul.f32 %v1582_v11, %v465_v13 }
 0x774   :  { %v467_v15 = vadd.f32 %v1582_v11, %v466_v14 }
 0x776   :  { %v471_v18 = vsel %vm470_vm15, %v1582_v11, %v467_v15 }
 0x777   :  { %v476_v22 = vsel %vm473_vm1, %v475_v19, %v471_v18 }
 0x778   :  { %v479_v24 = vmul.f32 %v476_v22, %v1897_v48 }
 0x7d5   :  { %v482_v21 = vpop.permute.xlu0 %481 }
 0x7d6   :  { %v484_v23 = vmul.f32 %v482_v21, %v476_v22 }
 0x7d8   :  { %486 = vrot.lane.b32.xlu1 %v484_v23, %s1682_s0 }
 0x84a   :  { %v487_v25 = vpop.permute.xlu1 %486 }
 0x84b   :  { %v489_v26 = vadd.f32 %v487_v25, %v479_v24 }
 0x84d   :  { %1583 = vtanh.f32 %v489_v26 }
 0x853   :  { %v1584_v27 = vpop.eup %1583 }
 0x854   :  { %492 = vrot.lane.b32.xlu2 %v1584_v27, %s1681_s19 }
 0x8ae   :  { %v493_v32 = vpop.permute.xlu2 %492 }
 0x8af   :  { %v495_v33 = vmul.f32 %v493_v32, %v476_v22 }
 0x8b1   :  { %v496_v34 = vpack.c.bf16 %v495_v33, %v495_v33  ;;  %v95_v33 = vperm.slane %v1794_v5, 6 }
 0x8b3   :  { %498 = vrot.lane.b32.xlu0 %v496_v34, %s1682_s0  ;;  %v247_v34 = vadd.f32 %v1935_v62, %v95_v33 }
 0x925   :  { %v499_v35 = vpop.permute.xlu0 %498 }
 0x926   :  { %1491 = vmatmul.msk.bf16.vlgmr.msrb.gmra.mxu3 %vm105_vm0, %v499_v35 }
 0x9a9   :  { %v512_v41 = vpop.f32.mrf.mxu3 }
 0x9aa   :  { %v516_v4 = vadd.f32 %v512_v41, %v207_v40 }
 0x9ac   :  { %1585 = vtanh.f32 %v516_v4  ;;  %v1492_v38 = vmul.f32 -1.442695, %v516_v4 }
 0x9ae   :  { %1587 = vpow2.f32 %v1492_v38 }
 0x9b1   :  { %v514_v36 = vpop.f32.mrf.mxu3 }
 0x9b2   :  { %v1586_v42 = vpop.eup %1585 }
 0x9b3   :  { %539 = vrot.lane.b32.xlu1 %v1586_v42, %s1681_s19 }
 0x9b4   :  { %v1588_v44 = vpop.eup %1587 }
 0x9b5   :  { %v520_v45 = vadd.f32 1.0, %v1588_v44 }
 0x9b7   :  { %1589 = vrcp.f32 %v520_v45  ;;  %v532_v51 = vand.u32 2147483648, %v520_v45  ;;  %vm526_vm3 = vweird.f32 %v520_v45  ;;  %v530_v43 = vand.u32 2147483647, %v520_v45 }
 0x9b9   :  { %v533_v53 = vor.u32 1.1754944e-38, %v532_v51  ;;  %vm531_vm5 = vcmp.eq.f32.partialorder %v530_v43, 8.507059e+37 }
 0x9bd   :  { %v1590_v46 = vpop.eup %1589 }
 0x9be   :  { %v522_v47 = vmul.f32 %v1590_v46, %v520_v45  ;;  %vm527_vm2 = vweird.f32 %v1590_v46 }
 0x9bf   :  { %vm528_vm4 = vmor %vm526_vm3, %vm527_vm2  ;;  %vm763_vm3 = vcmask 25600  }
 0x9c0   :  { %v523_v48 = vsub.f32 1.0, %v522_v47 }
 0x9c2   :  { %v524_v49 = vmul.f32 %v1590_v46, %v523_v48 }
 0x9c4   :  { %v525_v50 = vadd.f32 %v1590_v46, %v524_v49 }
 0x9c6   :  { %v529_v52 = vsel %vm528_vm4, %v1590_v46, %v525_v50 }
 0x9c7   :  { %v534_v55 = vsel %vm531_vm5, %v533_v53, %v529_v52  ;;  %vm826_vm5 = vcmask 1043456  }
 0x9c8   :  { %v537_v57 = vmul.f32 %v534_v55, %v489_v26 }
 0xa25   :  { %v540_v54 = vpop.permute.xlu1 %539 }
 0xa26   :  { %v542_v56 = vmul.f32 %v540_v54, %v534_v55 }
 0xa28   :  { %544 = vrot.lane.b32.xlu2 %v542_v56, %s1682_s0 }
 0xa82   :  { %v545_v58 = vpop.permute.xlu2 %544 }
 0xa83   :  { %v547_v59 = vadd.f32 %v545_v58, %v537_v57 }
 0xa85   :  { %1591 = vtanh.f32 %v547_v59 }
 0xa8b   :  { %v1592_v60 = vpop.eup %1591 }
 0xa8c   :  { %550 = vrot.lane.b32.xlu0 %v1592_v60, %s1681_s19 }
 0xafe   :  { %v551_v61 = vpop.permute.xlu0 %550 }
 0xaff   :  { %v553_v63 = vmul.f32 %v551_v61, %v534_v55  ;;  %v96_v61 = vperm.slane %v1794_v5, 7 }
 0xb01   :  { %v554_v0 = vpack.c.bf16 %v553_v63, %v553_v63  ;;  %v267_v63 = vadd.f32 %v1960_v37, %v96_v61 }
 0xb03   :  { %556 = vrot.lane.b32.xlu1 %v554_v0, %s1682_s0 }
 0xb75   :  { %v557_v1 = vpop.permute.xlu1 %556 }
 0xb76   :  { %1493 = vmatmul.msk.bf16.vlgmr.msrb.gmra.mxu0 %vm105_vm0, %v557_v1 }
 0xbf3   :  { %v570_v6 = vpop.f32.mrf.mxu0 }
 0xbf4   :  { %v574_v7 = vadd.f32 %v570_v6, %v227_v3 }
 0xbf6   :  { %1593 = vtanh.f32 %v574_v7  ;;  %v1494_v10 = vmul.f32 -1.442695, %v574_v7 }
 0xbf8   :  { %1595 = vpow2.f32 %v1494_v10 }
 0xbfb   :  { %v572_v8 = vpop.f32.mrf.mxu0 }
 0xbfc   :  { %v1594_v9 = vpop.eup %1593 }
 0xbfd   :  { %597 = vrot.lane.b32.xlu2 %v1594_v9, %s1681_s19 }
 0xbfe   :  { %v1596_v11 = vpop.eup %1595 }
 0xbff   :  { %v578_v12 = vadd.f32 1.0, %v1596_v11 }
 0xc01   :  { %1597 = vrcp.f32 %v578_v12  ;;  %v590_v18 = vand.u32 2147483648, %v578_v12  ;;  %vm584_vm7 = vweird.f32 %v578_v12  ;;  %v588_v20 = vand.u32 2147483647, %v578_v12 }
 0xc03   :  { %v591_v21 = vor.u32 1.1754944e-38, %v590_v18  ;;  %vm589_vm9 = vcmp.eq.f32.partialorder %v588_v20, 8.507059e+37 }
 0xc07   :  { %v1598_v13 = vpop.eup %1597 }
 0xc08   :  { %v580_v14 = vmul.f32 %v1598_v13, %v578_v12  ;;  %vm585_vm6 = vweird.f32 %v1598_v13 }
 0xc09   :  { %vm586_vm8 = vmor %vm584_vm7, %vm585_vm6  ;;  %vm822_vm7 = vcmask 31744  }
 0xc0a   :  { %v581_v15 = vsub.f32 1.0, %v580_v14 }
 0xc0c   :  { %v582_v16 = vmul.f32 %v1598_v13, %v581_v15 }
 0xc0e   :  { %v583_v17 = vadd.f32 %v1598_v13, %v582_v16 }
 0xc10   :  { %v587_v19 = vsel %vm586_vm8, %v1598_v13, %v583_v17 }
 0xc11   :  { %v592_v23 = vsel %vm589_vm9, %v591_v21, %v587_v19  ;;  %vm871_vm9 = vcmask 1041408  }
 0xc12   :  { %v595_v25 = vmul.f32 %v592_v23, %v547_v59 }
 0xc57   :  { %v598_v22 = vpop.permute.xlu2 %597 }
 0xc58   :  { %v600_v24 = vmul.f32 %v598_v22, %v592_v23 }
 0xc5a   :  { %602 = vrot.lane.b32.xlu0 %v600_v24, %s1682_s0  ;;  %v730_v24 = vld [vmem:[%s2277_s5 + $0x10] sm:$0xff] }
 0xccc   :  { %v603_v26 = vpop.permute.xlu0 %602 }
 0xccd   :  { %v605_v27 = vadd.f32 %v603_v26, %v595_v25  ;;  %v729_v25 = vld [vmem:[%s2277_s5 + $0x8] sm:$0xff]  ;;  %v728_v26 = vld [vmem:[%s2277_s5] sm:$0xff] }
 0xccf   :  { %1599 = vtanh.f32 %v605_v27 }
 0xcd5   :  { %v1600_v28 = vpop.eup %1599 }
 0xcd6   :  { %608 = vrot.lane.b32.xlu1 %v1600_v28, %s1681_s19 }
 0xd48   :  { %v609_v29 = vpop.permute.xlu1 %608 }
 0xd49   :  { %v611_v30 = vmul.f32 %v609_v29, %v592_v23  ;;  %v731_v23 = vld [vmem:[%s2277_s5 + $0x18] sm:$0xff] }
 0xd4a   :  { %753 = vmatpush.msra.mxu3 %v731_v23  ;;  %v792_v29 = vld [vmem:[%s2279_s7 + $0x18] sm:$0xff] }
 0xd4b   :  { %v612_v31 = vpack.c.bf16 %v611_v30, %v611_v30  ;;  %v791_v30 = vld [vmem:[%s2279_s7 + $0x10] sm:$0xff] }
 0xd4c   :  { %754 = vmatpush.msra.mxu3 %v730_v24 }
 0xd4d   :  { %614 = vrot.lane.b32.xlu2 %v612_v31, %s1682_s0  ;;  %v790_v31 = vld [vmem:[%s2279_s7 + $0x8] sm:$0xff] }
 0xd4e   :  { %755 = vmatpush.msra.mxu3 %v729_v25 }
 0xd50   :  { %756 = vmatpush.msra.mxu3 %v728_v26 }
 0xd52   :  { %809 = vmatpush.msrb.mxu3 %v792_v29  ;;  %v1530_v29 = vld [vmem:[%s2286_s13] sm:$0xff] }
 0xd54   :  { %810 = vmatpush.msrb.mxu3 %v791_v30 }
 0xd56   :  { %811 = vmatpush.msrb.mxu3 %v790_v31 }
 0xda7   :  { %v615_v32 = vpop.permute.xlu2 %614 }
 0xda8   :  { %1495 = vmatmul.msk.bf16.vlgmr.msrb.gmra.mxu1 %vm105_vm0, %v615_v32  ;;  %v789_v32 = vld [vmem:[%s2279_s7] sm:$0xff] }
 0xda9   :  { %812 = vmatpush.msrb.mxu3 %v789_v32 }
 0xe25   :  { %v628_v35 = vpop.f32.mrf.mxu1 }
 0xe26   :  { %v632_v39 = vadd.f32 %v628_v35, %v247_v34  ;;  %v1548_v34 = vld [vmem:[%s2278_s6] ss:$0 sm:$0xff] }
 0xe28   :  { %1601 = vtanh.f32 %v632_v39  ;;  %v1496_v4 = vmul.f32 -1.442695, %v632_v39  ;;  %v761_v39 = vld [vmem:[%s2281_s1] sm:$0x3] }
 0xe2a   :  { %1603 = vpow2.f32 %v1496_v4 }
 0xe2d   :  { %v630_v40 = vpop.f32.mrf.mxu1 }
 0xe2e   :  { %v1602_v41 = vpop.eup %1601 }
 0xe2f   :  { %655 = vrot.lane.b32.xlu0 %v1602_v41, %s1681_s19 }
 0xe30   :  { %v1604_v36 = vpop.eup %1603 }
 0xe31   :  { %v636_v42 = vadd.f32 1.0, %v1604_v36  ;;  %v767_v36 = vlaneseq }
 0xe33   :  { %1605 = vrcp.f32 %v636_v42  ;;  %v648_v48 = vand.u32 2147483648, %v636_v42  ;;  %vm642_vm11 = vweird.f32 %v636_v42  ;;  %v646_v62 = vand.u32 2147483647, %v636_v42 }
 0xe35   :  { %v649_v50 = vor.u32 1.1754944e-38, %v648_v48  ;;  %vm647_vm13 = vcmp.eq.f32.partialorder %v646_v62, 8.507059e+37  ;;  %v817_v48 = vld [vmem:[%s2282_s9] sm:$0xf] }
 0xe36   :  { %1502 = vmatpush.msk.msra.mxu0 %vm826_vm5, %v817_v48 }
 0xe39   :  { %v1606_v38 = vpop.eup %1605 }
 0xe3a   :  { %v638_v44 = vmul.f32 %v1606_v38, %v636_v42  ;;  %vm643_vm10 = vweird.f32 %v1606_v38  ;;  %v768_v42 = vand.u32 127, %v767_v36 }
 0xe3b   :  { %vm644_vm12 = vmor %vm642_vm11, %vm643_vm10  ;;  %vm882_vm10 = vcmask 64512  }
 0xe3c   :  { %v639_v45 = vsub.f32 1.0, %v638_v44 }
 0xe3e   :  { %v640_v46 = vmul.f32 %v1606_v38, %v639_v45 }
 0xe40   :  { %v641_v47 = vadd.f32 %v1606_v38, %v640_v46 }
 0xe42   :  { %v645_v49 = vsel %vm644_vm12, %v1606_v38, %v641_v47 }
 0xe43   :  { %v650_v43 = vsel %vm647_vm13, %v649_v50, %v645_v49 }
 0xe44   :  { %v653_v53 = vmul.f32 %v650_v43, %v605_v27 }
 0xea1   :  { %v656_v51 = vpop.permute.xlu0 %655 }
 0xea2   :  { %v658_v52 = vmul.f32 %v656_v51, %v650_v43 }
 0xea4   :  { %660 = vrot.lane.b32.xlu1 %v658_v52, %s1682_s0 }
 0xf16   :  { %v661_v54 = vpop.permute.xlu1 %660 }
 0xf17   :  { %v663_v55 = vadd.f32 %v661_v54, %v653_v53 }
 0xf19   :  { %1607 = vtanh.f32 %v663_v55 }
 0xf1f   :  { %v1608_v56 = vpop.eup %1607 }
 0xf20   :  { %666 = vrot.lane.b32.xlu2 %v1608_v56, %s1681_s19 }
 0xf7a   :  { %v667_v57 = vpop.permute.xlu2 %666 }
 0xf7b   :  { %v669_v58 = vmul.f32 %v667_v57, %v650_v43  ;;  %v878_v43 = vld [vmem:[%s2284_s11] sm:$0xff]  ;;  %v1683_v57 = vmov 0.0  }
 0xf7c   :  { %901 = vmatpush.msra.mxu1 %v878_v43  ;;  %851 = vst [vmem:[%s2287_s16] sm:$0xff] %v1683_v57 }
 0xf7d   :  { %v670_v59 = vpack.c.bf16 %v669_v58, %v669_v58 }
 0xf7f   :  { %672 = vrot.lane.b32.xlu0 %v670_v59, %s1682_s0  ;;  %v1549_v59 = vld [vmem:[%s2280_s8] ss:$0 sm:$0xff] }
 0xff1   :  { %v673_v60 = vpop.permute.xlu0 %672 }
 0xff2   :  { %1497 = vmatmul.msk.bf16.vlgmr.msra.gmra.mxu2 %vm105_vm0, %v673_v60  ;;  %v1550_v60 = vld [vmem:[%s2283_s10] ss:$0 sm:$0xff] }
0x1075   :  { %v686_v0 = vpop.f32.mrf.mxu2 }
0x1076   :  { %v690_v1 = vadd.f32 %v686_v0, %v267_v63 }
0x1078   :  { %1609 = vtanh.f32 %v690_v1  ;;  %v1498_v6 = vmul.f32 -1.442695, %v690_v1 }
0x107a   :  { %1611 = vpow2.f32 %v1498_v6 }
0x107d   :  { %v688_v2 = vpop.f32.mrf.mxu2 }
0x107e   :  { %v1610_v3 = vpop.eup %1609 }
0x107f   :  { %713 = vrot.lane.b32.xlu1 %v1610_v3, %s1681_s19 }
0x1080   :  { %v1612_v7 = vpop.eup %1611 }
0x1081   :  { %v694_v8 = vadd.f32 1.0, %v1612_v7  ;;  %v2046_v7 = vld [vmem:[%s2285_s12] ss:$0 sm:$0xff] }
0x1083   :  { %1613 = vrcp.f32 %v694_v8  ;;  %v706_v5 = vand.u32 2147483648, %v694_v8  ;;  %vm700_vm15 = vweird.f32 %v694_v8  ;;  %v704_v37 = vand.u32 2147483647, %v694_v8 }
0x1085   :  { %v707_v15 = vor.u32 1.1754944e-38, %v706_v5  ;;  %vm705_vm2 = vcmp.eq.f32.partialorder %v704_v37, 8.507059e+37 }
0x1089   :  { %v1614_v9 = vpop.eup %1613 }
0x108a   :  { %v696_v10 = vmul.f32 %v1614_v9, %v694_v8  ;;  %vm701_vm14 = vweird.f32 %v1614_v9 }
0x108b   :  { %vm702_vm1 = vmor %vm700_vm15, %vm701_vm14 }
0x108c   :  { %v697_v11 = vsub.f32 1.0, %v696_v10 }
0x108e   :  { %v698_v12 = vmul.f32 %v1614_v9, %v697_v11 }
0x1090   :  { %v699_v13 = vadd.f32 %v1614_v9, %v698_v12 }
0x1092   :  { %v703_v14 = vsel %vm702_vm1, %v1614_v9, %v699_v13 }
0x1093   :  { %v708_v17 = vsel %vm705_vm2, %v707_v15, %v703_v14 }
0x1094   :  { %v711_v20 = vmul.f32 %v708_v17, %v663_v55 }
0x10f1   :  { %v714_v16 = vpop.permute.xlu1 %713 }
0x10f2   :  { %v716_v18 = vmul.f32 %v714_v16, %v708_v17 }
0x10f4   :  { %718 = vrot.lane.b32.xlu2 %v716_v18, %s1682_s0 }
0x114e   :  { %v719_v19 = vpop.permute.xlu2 %718 }
0x114f   :  { %v721_v21 = vadd.f32 %v719_v19, %v711_v20 }
0x1151   :  { %1615 = vtanh.f32 %v721_v21 }
0x1157   :  { %v1616_v22 = vpop.eup %1615 }
0x1158   :  { %724 = vrot.lane.b32.xlu0 %v1616_v22, %s1681_s19 }
0x11ca   :  { %v725_v27 = vpop.permute.xlu0 %724 }
0x11cb   :  { %v727_v28 = vmul.f32 %v725_v27, %v708_v17 }
0x11cd   :  { %737 = vrot.lane.b32.xlu1 %v727_v28, %s1682_s0  ;;  %v1531_v28 = vld [vmem:[%s2286_s13 + $0x8] sm:$0xff]  ;;  %s1684_s13 = smov 96  }
0x11ce   :  { %968 = vmatpush.bf16.msrb.mxu2 %v1531_v28  ;;  %1082 = vmatpush.bf16.msrb.mxu0 %v1531_v28 }
0x11cf   :  { %1139 = vmatpush.bf16.msrb.mxu1 %v1531_v28 }
0x11d2   :  { %969 = vmatpush.bf16.msrb.mxu2 %v1530_v29  ;;  %1083 = vmatpush.bf16.msrb.mxu0 %v1530_v29 }
0x11d3   :  { %1140 = vmatpush.bf16.msrb.mxu1 %v1530_v29 }
0x11d6   :  { %1196 = vmatpush.bf16.msra.mxu2 %v1531_v28 }
0x11da   :  { %1197 = vmatpush.bf16.msra.mxu2 %v1530_v29 }
0x123f   :  { %v738_v33 = vpop.permute.xlu1 %737 }
0x1240   :  { %1499 = vmatmul.msk.f32.vlgmr.msra.gmra.mxu3 %vm105_vm0, %v738_v33 }
0x1241   :  { %1025 = vmatpush.bf16.msra.mxu3 %v1531_v28 }
0x1245   :  { %1026 = vmatpush.bf16.msra.mxu3 %v1530_v29 }
0x1248   :  { %1501 = vmatmul.msk.f32.vlgmr.msrb.gmra.mxu3 %vm105_vm0, %v738_v33 }
0x1249   :  { %1253 = vmatpush.bf16.msrb.mxu3 %v1531_v28 }
0x124d   :  { %1254 = vmatpush.bf16.msrb.mxu3 %v1530_v29 }
0x12c3   :  { %v758_v35 = vpop.f32.mrf.mxu3 }
0x12c4   :  { %v759_v40 = vadd.f32 %v1548_v34, %v758_v35 }
0x12c6   :  { %v762_v41 = vadd.f32 %v761_v39, %v759_v40 }
0x12c8   :  { %v764_v4 = vsel %vm763_vm3, %v762_v41, -inf }
0x12c9   :  { %765 = vmax.xlane.f32.xlu2 %v764_v4 }
0x12cb   :  { %v814_v61 = vpop.f32.mrf.mxu3 }
0x12cc   :  { %v2037_v0 = vadd.f32 %v1549_v59, %v814_v61 }
0x133c   :  { %v766_v38 = vpop.xlane.xlu2 %765 }
0x133d   :  { %vm769_vm4 = vcmp.eq.f32.partialorder %v762_v41, %v766_v38 }
0x133e   :  { %v770_v44 = vsel %vm769_vm4, %v768_v42, 4 }
0x133f   :  { %v771_v45 = vsel %vm763_vm3, %v770_v44, 2147483647 }
0x1340   :  { %v773_v46 = vshra.s32 %v771_v45, 16  ;;  %v772_v62 = vand.u32 65535, %v771_v45 }
0x1342   :  { %v775_v47 = vcvt.s32.f32 %v773_v46  ;;  %v774_v50 = vcvt.s32.f32 %v772_v62 }
0x1344   :  { %776 = vmin.xlane.f32.xlu0 %v775_v47 }
0x13b7   :  { %v777_v49 = vpop.xlane.xlu0 %776 }
0x13b8   :  { %vm778_vm6 = vcmp.eq.f32.partialorder %v775_v47, %v777_v49  ;;  %v783_v52 = vcvt.f32.s32 %v777_v49 }
0x13b9   :  { %v779_v51 = vsel %vm778_vm6, %v774_v50, inf }
0x13ba   :  { %780 = vmin.xlane.f32.xlu1 %v779_v51  ;;  %v784_v54 = vshll.u32 %v783_v52, 16 }
0x142d   :  { %v781_v53 = vpop.xlane.xlu1 %780 }
0x142e   :  { %v782_v55 = vcvt.f32.s32 %v781_v53 }
0x1430   :  { %v785_v56 = vadd.s32 %v784_v54, %v782_v55 }
0x1432   :  { %vm786_vm8 = vcmp.eq.s32.totalorder %v768_v42, %v785_v56 }
0x1433   :  { %v2028_v58 = vsel %vm786_vm8, 1.0, %v1683_v57 }
0x1434   :  { %1503 = vmatmul.msk.f32.vlgmr.msra.gmra.mxu0 %vm822_vm7, %v2028_v58 }
0x1435   :  { %1310 = vmatpush.bf16.msra.mxu0 %v1531_v28 }
0x1439   :  { %1311 = vmatpush.bf16.msra.mxu0 %v1530_v29 }
0x14b1   :  { %v847_v63 = vpop.f32.mrf.mxu0 }
0x14b2   :  { %v848_v1 = vadd.f32 %v1550_v60, %v847_v63 }
0x14b4   :  { %v2040_v2 = vadd.f32 %v848_v1, %v2037_v0 }
0x14b6   :  { %v869_v3 = vrot.slane %v2040_v2, 6 }
0x14b8   :  { %v872_v6 = vsel %vm871_vm9, %v848_v1, %v869_v3 }
0x14b9   :  { %1504 = vmatmul.msk.f32.vlgmr.msra.gmra.mxu1 %vm882_vm10, %v872_v6 }
0x1536   :  { %v903_v8 = vpop.f32.mrf.mxu1 }
0x1537   :  { %v904_v9 = vadd.f32 %v2046_v7, %v903_v8 }
0x1539   :  { %1617 = vtanh.f32 %v904_v9  ;;  %v1505_v11 = vmul.f32 -1.442695, %v904_v9 }
0x153b   :  { %1619 = vpow2.f32 %v1505_v11 }
0x153f   :  { %v1618_v10 = vpop.eup %1617 }
0x1540   :  { %928 = vrot.lane.b32.xlu2 %v1618_v10, %s1681_s19 }
0x1541   :  { %v1620_v12 = vpop.eup %1619 }
0x1542   :  { %v909_v13 = vadd.f32 1.0, %v1620_v12 }
0x1544   :  { %1621 = vrcp.f32 %v909_v13  ;;  %v921_v17 = vand.u32 2147483648, %v909_v13  ;;  %vm915_vm12 = vweird.f32 %v909_v13  ;;  %v919_v18 = vand.u32 2147483647, %v909_v13 }
0x1546   :  { %v922_v19 = vor.u32 1.1754944e-38, %v921_v17  ;;  %vm920_vm14 = vcmp.eq.f32.partialorder %v919_v18, 8.507059e+37 }
0x154a   :  { %v1622_v5 = vpop.eup %1621 }
0x154b   :  { %v911_v37 = vmul.f32 %v1622_v5, %v909_v13  ;;  %vm916_vm11 = vweird.f32 %v1622_v5 }
0x154c   :  { %vm917_vm13 = vmor %vm915_vm12, %vm916_vm11 }
0x154d   :  { %v912_v14 = vsub.f32 1.0, %v911_v37 }
0x154f   :  { %v913_v15 = vmul.f32 %v1622_v5, %v912_v14 }
0x1551   :  { %v914_v16 = vadd.f32 %v1622_v5, %v913_v15 }
0x1553   :  { %v918_v20 = vsel %vm917_vm13, %v1622_v5, %v914_v16 }
0x1554   :  { %v923_v22 = vsel %vm920_vm14, %v922_v19, %v918_v20 }
0x1555   :  { %v926_v24 = vmul.f32 0.0, %v923_v22 }
0x159a   :  { %v929_v21 = vpop.permute.xlu2 %928 }
0x159b   :  { %v931_v23 = vmul.f32 %v929_v21, %v923_v22 }
0x159d   :  { %933 = vrot.lane.b32.xlu0 %v931_v23, %s1682_s0 }
0x160f   :  { %v934_v25 = vpop.permute.xlu0 %933 }
0x1610   :  { %v936_v26 = vadd.f32 %v934_v25, %v926_v24 }
0x1612   :  { %1623 = vtanh.f32 %v936_v26 }
0x1618   :  { %v1624_v27 = vpop.eup %1623 }
0x1619   :  { %939 = vrot.lane.b32.xlu1 %v1624_v27, %s1681_s19 }
0x168b   :  { %v940_v30 = vpop.permute.xlu1 %939 }
0x168c   :  { %v2058_v31 = vmul.f32 %v940_v30, %v923_v22 }
0x168e   :  { %v943_v32 = vpack.c.bf16 %v2058_v31, %v2058_v31 }
0x1690   :  { %945 = vrot.lane.b32.xlu2 %v943_v32, %s1682_s0 }
0x16ea   :  { %v946_v33 = vpop.permute.xlu2 %945 }
0x16eb   :  { %1514 = vmatmul.msk.bf16.vlgmr.msrb.gmra.mxu2 %vm105_vm0, %v946_v33 }
0x176e   :  { %v971_v34 = vpop.f32.mrf.mxu2 }
0x176f   :  { %v972_v35 = vadd.f32 %v2046_v7, %v971_v34 }
0x1771   :  { %1625 = vtanh.f32 %v972_v35  ;;  %v1515_v41 = vmul.f32 -1.442695, %v972_v35 }
0x1773   :  { %1627 = vpow2.f32 %v1515_v41 }
0x1776   :  { %v973_v39 = vpop.f32.mrf.mxu2 }
0x1777   :  { %v1626_v40 = vpop.eup %1625 }
0x1778   :  { %997 = vrot.lane.b32.xlu0 %v1626_v40, %s1681_s19 }
0x1779   :  { %v1628_v4 = vpop.eup %1627 }
0x177a   :  { %v978_v36 = vadd.f32 1.0, %v1628_v4 }
0x177c   :  { %1629 = vrcp.f32 %v978_v36  ;;  %v990_v47 = vand.u32 2147483648, %v978_v36  ;;  %vm984_vm1 = vweird.f32 %v978_v36  ;;  %v988_v48 = vand.u32 2147483647, %v978_v36 }
0x177e   :  { %v991_v49 = vor.u32 1.1754944e-38, %v990_v47  ;;  %vm989_vm3 = vcmp.eq.f32.partialorder %v988_v48, 8.507059e+37 }
0x1782   :  { %v1630_v42 = vpop.eup %1629 }
0x1783   :  { %v980_v38 = vmul.f32 %v1630_v42, %v978_v36  ;;  %vm985_vm15 = vweird.f32 %v1630_v42 }
0x1784   :  { %vm986_vm2 = vmor %vm984_vm1, %vm985_vm15 }
0x1785   :  { %v981_v44 = vsub.f32 1.0, %v980_v38 }
0x1787   :  { %v982_v45 = vmul.f32 %v1630_v42, %v981_v44 }
0x1789   :  { %v983_v46 = vadd.f32 %v1630_v42, %v982_v45 }
0x178b   :  { %v987_v62 = vsel %vm986_vm2, %v1630_v42, %v983_v46 }
0x178c   :  { %v992_v51 = vsel %vm989_vm3, %v991_v49, %v987_v62 }
0x178d   :  { %v995_v52 = vmul.f32 %v992_v51, %v936_v26 }
0x17ea   :  { %v998_v50 = vpop.permute.xlu0 %997 }
0x17eb   :  { %v1000_v43 = vmul.f32 %v998_v50, %v992_v51 }
0x17ed   :  { %1002 = vrot.lane.b32.xlu2 %v1000_v43, %s1682_s0 }
0x1847   :  { %v1003_v53 = vpop.permute.xlu2 %1002 }
0x1848   :  { %v1005_v54 = vadd.f32 %v1003_v53, %v995_v52 }
0x184a   :  { %1631 = vtanh.f32 %v1005_v54 }
0x1850   :  { %v1632_v55 = vpop.eup %1631 }
0x1851   :  { %1008 = vrot.lane.b32.xlu1 %v1632_v55, %s1681_s19 }
0x18c3   :  { %v1009_v56 = vpop.permute.xlu1 %1008 }
0x18c4   :  { %v2068_v59 = vmul.f32 %v1009_v56, %v992_v51 }
0x18c6   :  { %v1012_v60 = vpack.c.bf16 %v2068_v59, %v2068_v59 }
0x18c8   :  { %1014 = vrot.lane.b32.xlu0 %v1012_v60, %s1682_s0 }
0x193a   :  { %v1015_v61 = vpop.permute.xlu0 %1014 }
0x193b   :  { %1516 = vmatmul.msk.bf16.vlgmr.msra.gmra.mxu3 %vm105_vm0, %v1015_v61 }
0x19be   :  { %v1028_v63 = vpop.f32.mrf.mxu3 }
0x19bf   :  { %v1029_v1 = vadd.f32 %v2046_v7, %v1028_v63 }
0x19c1   :  { %1633 = vtanh.f32 %v1029_v1  ;;  %v1517_v8 = vmul.f32 -1.442695, %v1029_v1 }
0x19c3   :  { %1635 = vpow2.f32 %v1517_v8 }
0x19c6   :  { %v1030_v3 = vpop.f32.mrf.mxu3 }
0x19c7   :  { %v1634_v6 = vpop.eup %1633 }
0x19c8   :  { %1054 = vrot.lane.b32.xlu2 %v1634_v6, %s1681_s19 }
0x19c9   :  { %v1636_v9 = vpop.eup %1635 }
0x19ca   :  { %v1035_v10 = vadd.f32 1.0, %v1636_v9 }
0x19cc   :  { %1637 = vrcp.f32 %v1035_v10  ;;  %v1047_v14 = vand.u32 2147483648, %v1035_v10  ;;  %vm1041_vm5 = vweird.f32 %v1035_v10  ;;  %v1045_v15 = vand.u32 2147483647, %v1035_v10 }
0x19ce   :  { %v1048_v17 = vor.u32 1.1754944e-38, %v1047_v14  ;;  %vm1046_vm7 = vcmp.eq.f32.partialorder %v1045_v15, 8.507059e+37 }
0x19d2   :  { %v1638_v11 = vpop.eup %1637 }
0x19d3   :  { %v1037_v12 = vmul.f32 %v1638_v11, %v1035_v10  ;;  %vm1042_vm4 = vweird.f32 %v1638_v11 }
0x19d4   :  { %vm1043_vm6 = vmor %vm1041_vm5, %vm1042_vm4 }
0x19d5   :  { %v1038_v13 = vsub.f32 1.0, %v1037_v12 }
0x19d7   :  { %v1039_v5 = vmul.f32 %v1638_v11, %v1038_v13 }
0x19d9   :  { %v1040_v37 = vadd.f32 %v1638_v11, %v1039_v5 }
0x19db   :  { %v1044_v16 = vsel %vm1043_vm6, %v1638_v11, %v1040_v37 }
0x19dc   :  { %v1049_v20 = vsel %vm1046_vm7, %v1048_v17, %v1044_v16 }
0x19dd   :  { %v1052_v21 = vmul.f32 %v1049_v20, %v1005_v54 }
0x1a22   :  { %v1055_v18 = vpop.permute.xlu2 %1054 }
0x1a23   :  { %v1057_v19 = vmul.f32 %v1055_v18, %v1049_v20 }
0x1a25   :  { %1059 = vrot.lane.b32.xlu1 %v1057_v19, %s1682_s0 }
0x1a97   :  { %v1060_v22 = vpop.permute.xlu1 %1059 }
0x1a98   :  { %v1062_v23 = vadd.f32 %v1060_v22, %v1052_v21 }
0x1a9a   :  { %1639 = vtanh.f32 %v1062_v23 }
0x1aa0   :  { %v1640_v24 = vpop.eup %1639 }
0x1aa1   :  { %1065 = vrot.lane.b32.xlu0 %v1640_v24, %s1681_s19 }
0x1b13   :  { %v1066_v25 = vpop.permute.xlu0 %1065 }
0x1b14   :  { %v2078_v26 = vmul.f32 %v1066_v25, %v1049_v20 }
0x1b16   :  { %v1069_v27 = vpack.c.bf16 %v2078_v26, %v2078_v26 }
0x1b18   :  { %1071 = vrot.lane.b32.xlu2 %v1069_v27, %s1682_s0 }
0x1b72   :  { %v1072_v28 = vpop.permute.xlu2 %1071 }
0x1b73   :  { %1518 = vmatmul.msk.bf16.vlgmr.msrb.gmra.mxu0 %vm105_vm0, %v1072_v28 }
0x1bf0   :  { %v1085_v29 = vpop.f32.mrf.mxu0 }
0x1bf1   :  { %v1086_v30 = vadd.f32 %v2046_v7, %v1085_v29 }
0x1bf3   :  { %1641 = vtanh.f32 %v1086_v30  ;;  %v1519_v34 = vmul.f32 -1.442695, %v1086_v30 }
0x1bf5   :  { %1643 = vpow2.f32 %v1519_v34 }
0x1bf8   :  { %v1087_v32 = vpop.f32.mrf.mxu0 }
0x1bf9   :  { %v1642_v33 = vpop.eup %1641 }
0x1bfa   :  { %1111 = vrot.lane.b32.xlu1 %v1642_v33, %s1681_s19 }
0x1bfb   :  { %v1644_v35 = vpop.eup %1643 }
0x1bfc   :  { %v1092_v39 = vadd.f32 1.0, %v1644_v35 }
0x1bfe   :  { %1645 = vrcp.f32 %v1092_v39  ;;  %v1104_v38 = vand.u32 2147483648, %v1092_v39  ;;  %vm1098_vm9 = vweird.f32 %v1092_v39  ;;  %v1102_v44 = vand.u32 2147483647, %v1092_v39 }
0x1c00   :  { %v1105_v46 = vor.u32 1.1754944e-38, %v1104_v38  ;;  %vm1103_vm11 = vcmp.eq.f32.partialorder %v1102_v44, 8.507059e+37 }
0x1c04   :  { %v1646_v40 = vpop.eup %1645 }
0x1c05   :  { %v1094_v41 = vmul.f32 %v1646_v40, %v1092_v39  ;;  %vm1099_vm8 = vweird.f32 %v1646_v40 }
0x1c06   :  { %vm1100_vm10 = vmor %vm1098_vm9, %vm1099_vm8 }
0x1c07   :  { %v1095_v4 = vsub.f32 1.0, %v1094_v41 }
0x1c09   :  { %v1096_v36 = vmul.f32 %v1646_v40, %v1095_v4 }
0x1c0b   :  { %v1097_v42 = vadd.f32 %v1646_v40, %v1096_v36 }
0x1c0d   :  { %v1101_v45 = vsel %vm1100_vm10, %v1646_v40, %v1097_v42 }
0x1c0e   :  { %v1106_v48 = vsel %vm1103_vm11, %v1105_v46, %v1101_v45 }
0x1c0f   :  { %v1109_v49 = vmul.f32 %v1106_v48, %v1062_v23 }
0x1c6c   :  { %v1112_v47 = vpop.permute.xlu1 %1111 }
0x1c6d   :  { %v1114_v62 = vmul.f32 %v1112_v47, %v1106_v48 }
0x1c6f   :  { %1116 = vrot.lane.b32.xlu0 %v1114_v62, %s1682_s0 }
0x1ce1   :  { %v1117_v50 = vpop.permute.xlu0 %1116 }
0x1ce2   :  { %v1119_v51 = vadd.f32 %v1117_v50, %v1109_v49 }
0x1ce4   :  { %1647 = vtanh.f32 %v1119_v51 }
0x1cea   :  { %v1648_v43 = vpop.eup %1647 }
0x1ceb   :  { %1122 = vrot.lane.b32.xlu2 %v1648_v43, %s1681_s19 }
0x1d45   :  { %v1123_v52 = vpop.permute.xlu2 %1122 }
0x1d46   :  { %v2088_v53 = vmul.f32 %v1123_v52, %v1106_v48 }
0x1d48   :  { %v1126_v54 = vpack.c.bf16 %v2088_v53, %v2088_v53 }
0x1d4a   :  { %1128 = vrot.lane.b32.xlu1 %v1126_v54, %s1682_s0 }
0x1dbc   :  { %v1129_v55 = vpop.permute.xlu1 %1128 }
0x1dbd   :  { %1520 = vmatmul.msk.bf16.vlgmr.msrb.gmra.mxu1 %vm105_vm0, %v1129_v55 }
0x1e3a   :  { %v1142_v56 = vpop.f32.mrf.mxu1 }
0x1e3b   :  { %v1143_v60 = vadd.f32 %v2046_v7, %v1142_v56 }
0x1e3d   :  { %1649 = vtanh.f32 %v1143_v60  ;;  %v1521_v1 = vmul.f32 -1.442695, %v1143_v60 }
0x1e3f   :  { %1651 = vpow2.f32 %v1521_v1 }
0x1e42   :  { %v1144_v61 = vpop.f32.mrf.mxu1 }
0x1e43   :  { %v1650_v63 = vpop.eup %1649 }
0x1e44   :  { %1168 = vrot.lane.b32.xlu0 %v1650_v63, %s1681_s19 }
0x1e45   :  { %v1652_v3 = vpop.eup %1651 }
0x1e46   :  { %v1149_v6 = vadd.f32 1.0, %v1652_v3 }
0x1e48   :  { %1653 = vrcp.f32 %v1149_v6  ;;  %v1161_v13 = vand.u32 2147483648, %v1149_v6  ;;  %vm1155_vm13 = vweird.f32 %v1149_v6  ;;  %v1159_v5 = vand.u32 2147483647, %v1149_v6 }
0x1e4a   :  { %v1162_v14 = vor.u32 1.1754944e-38, %v1161_v13  ;;  %vm1160_vm15 = vcmp.eq.f32.partialorder %v1159_v5, 8.507059e+37 }
0x1e4e   :  { %v1654_v8 = vpop.eup %1653 }
0x1e4f   :  { %v1151_v9 = vmul.f32 %v1654_v8, %v1149_v6  ;;  %vm1156_vm12 = vweird.f32 %v1654_v8 }
0x1e50   :  { %vm1157_vm14 = vmor %vm1155_vm13, %vm1156_vm12  ;;  %vm1379_vm13 = vcmask 523264  }
0x1e51   :  { %v1152_v10 = vsub.f32 1.0, %v1151_v9 }
0x1e53   :  { %v1153_v11 = vmul.f32 %v1654_v8, %v1152_v10 }
0x1e55   :  { %v1154_v12 = vadd.f32 %v1654_v8, %v1153_v11 }
0x1e57   :  { %v1158_v37 = vsel %vm1157_vm14, %v1654_v8, %v1154_v12  ;;  %vm1381_vm14 = vcmask 785408  }
0x1e58   :  { %v1163_v16 = vsel %vm1160_vm15, %v1162_v14, %v1158_v37  ;;  %vm855_vm15 = vcmask 288000  }
0x1e59   :  { %v1166_v18 = vmul.f32 %v1163_v16, %v1119_v51 }
0x1eb6   :  { %v1169_v15 = vpop.permute.xlu0 %1168 }
0x1eb7   :  { %v1171_v17 = vmul.f32 %v1169_v15, %v1163_v16 }
0x1eb9   :  { %1173 = vrot.lane.b32.xlu2 %v1171_v17, %s1682_s0 }
0x1f13   :  { %v1174_v20 = vpop.permute.xlu2 %1173 }
0x1f14   :  { %v1176_v19 = vadd.f32 %v1174_v20, %v1166_v18 }
0x1f16   :  { %1655 = vtanh.f32 %v1176_v19 }
0x1f1c   :  { %v1656_v21 = vpop.eup %1655 }
0x1f1d   :  { %1179 = vrot.lane.b32.xlu1 %v1656_v21, %s1681_s19 }
0x1f8f   :  { %v1180_v22 = vpop.permute.xlu1 %1179 }
0x1f90   :  { %v2098_v23 = vmul.f32 %v1180_v22, %v1163_v16 }
0x1f92   :  { %v1183_v24 = vpack.c.bf16 %v2098_v23, %v2098_v23 }
0x1f94   :  { %1185 = vrot.lane.b32.xlu0 %v1183_v24, %s1682_s0 }
0x2006   :  { %v1186_v25 = vpop.permute.xlu0 %1185 }
0x2007   :  { %1522 = vmatmul.msk.bf16.vlgmr.msra.gmra.mxu2 %vm105_vm0, %v1186_v25 }
0x208a   :  { %v1199_v27 = vpop.f32.mrf.mxu2 }
0x208b   :  { %v1200_v28 = vadd.f32 %v2046_v7, %v1199_v27 }
0x208d   :  { %1657 = vtanh.f32 %v1200_v28  ;;  %v1523_v32 = vmul.f32 -1.442695, %v1200_v28 }
0x208f   :  { %1659 = vpow2.f32 %v1523_v32  ;;  %v1538_v32 = vpack.i.bf16 %v2058_v31, %v2098_v23 }
0x2092   :  { %v1201_v29 = vpop.f32.mrf.mxu2 }
0x2093   :  { %v1658_v30 = vpop.eup %1657 }
0x2094   :  { %1225 = vrot.lane.b32.xlu2 %v1658_v30, %s1681_s19 }
0x2095   :  { %v1660_v33 = vpop.eup %1659 }
0x2096   :  { %v1206_v34 = vadd.f32 1.0, %v1660_v33 }
0x2098   :  { %1661 = vrcp.f32 %v1206_v34  ;;  %v1218_v36 = vand.u32 2147483648, %v1206_v34  ;;  %vm1212_vm2 = vweird.f32 %v1206_v34  ;;  %v1216_v42 = vand.u32 2147483647, %v1206_v34 }
0x209a   :  { %v1219_v44 = vor.u32 1.1754944e-38, %v1218_v36  ;;  %vm1217_vm4 = vcmp.eq.f32.partialorder %v1216_v42, 8.507059e+37  ;;  %v1398_v36 = vld [vmem:[%s2288_s14 + $0x60] sm:$0xff] }
0x209e   :  { %v1662_v35 = vpop.eup %1661 }
0x209f   :  { %v1208_v39 = vmul.f32 %v1662_v35, %v1206_v34  ;;  %vm1213_vm1 = vweird.f32 %v1662_v35 }
0x20a0   :  { %vm1214_vm3 = vmor %vm1212_vm2, %vm1213_vm1  ;;  %vm867_vm1 = vcmask 419168   ;;  %vm1462_vm2 = vcmask 257024  }
0x20a1   :  { %v1209_v40 = vsub.f32 1.0, %v1208_v39 }
0x20a3   :  { %v1210_v41 = vmul.f32 %v1662_v35, %v1209_v40 }
0x20a5   :  { %v1211_v4 = vadd.f32 %v1662_v35, %v1210_v41 }
0x20a7   :  { %v1215_v38 = vsel %vm1214_vm3, %v1662_v35, %v1211_v4  ;;  %v1399_v4 = vld [vmem:[%s2288_s14 + $0x68] sm:$0xff] }
0x20a8   :  { %v1220_v46 = vsel %vm1217_vm4, %v1219_v44, %v1215_v38  ;;  %v1397_v44 = vld [vmem:[%s2288_s14 + $0x58] sm:$0xff] }
0x20a9   :  { %v1223_v48 = vmul.f32 %v1220_v46, %v1176_v19 }
0x20ee   :  { %v1226_v45 = vpop.permute.xlu2 %1225 }
0x20ef   :  { %v1228_v47 = vmul.f32 %v1226_v45, %v1220_v46 }
0x20f1   :  { %1230 = vrot.lane.b32.xlu1 %v1228_v47, %s1682_s0  ;;  %v1396_v47 = vld [vmem:[%s2288_s14 + $0x50] sm:$0xff] }
0x2163   :  { %v1231_v62 = vpop.permute.xlu1 %1230 }
0x2164   :  { %v1233_v49 = vadd.f32 %v1231_v62, %v1223_v48  ;;  %v1395_v62 = vld [vmem:[%s2288_s14 + $0x48] sm:$0xff] }
0x2166   :  { %1663 = vtanh.f32 %v1233_v49 }
0x216c   :  { %v1664_v50 = vpop.eup %1663 }
0x216d   :  { %1236 = vrot.lane.b32.xlu0 %v1664_v50, %s1681_s19  ;;  %v1393_v50 = vld [vmem:[%s2288_s14 + $0x38] sm:$0xff] }
0x21df   :  { %v1237_v51 = vpop.permute.xlu0 %1236 }
0x21e0   :  { %v2108_v43 = vmul.f32 %v1237_v51, %v1220_v46 }
0x21e2   :  { %v1240_v52 = vpack.c.bf16 %v2108_v43, %v2108_v43  ;;  %v1543_v51 = vpack.i.bf16 %v2068_v59, %v2108_v43  ;;  %v1390_v59 = vld [vmem:[%s2288_s14 + $0x20] sm:$0xff]  ;;  %v1389_v43 = vld [vmem:[%s2288_s14 + $0x18] sm:$0xff] }
0x21e4   :  { %1242 = vrot.lane.b32.xlu2 %v1240_v52, %s1682_s0  ;;  %v1392_v52 = vld [vmem:[%s2288_s14 + $0x30] sm:$0xff] }
0x223e   :  { %v1243_v54 = vpop.permute.xlu2 %1242 }
0x223f   :  { %1524 = vmatmul.msk.bf16.vlgmr.msrb.gmra.mxu3 %vm105_vm0, %v1243_v54  ;;  %v1391_v54 = vld [vmem:[%s2288_s14 + $0x28] sm:$0xff] }
0x22c2   :  { %v1256_v55 = vpop.f32.mrf.mxu3 }
0x22c3   :  { %v1257_v56 = vadd.f32 %v2046_v7, %v1256_v55  ;;  %v1387_v55 = vld [vmem:[%s2288_s14 + $0x8] sm:$0xff] }
0x22c5   :  { %1665 = vtanh.f32 %v1257_v56  ;;  %v1525_v63 = vmul.f32 -1.442695, %v1257_v56  ;;  %v1386_v56 = vld [vmem:[%s2288_s14] sm:$0xff] }
0x22c7   :  { %1667 = vpow2.f32 %v1525_v63  ;;  %v1415_v63 = vld [vmem:[%s2288_s14 + $0xe8] sm:$0xff] }
0x22ca   :  { %v1258_v60 = vpop.f32.mrf.mxu3 }
0x22cb   :  { %v1666_v61 = vpop.eup %1665  ;;  %v1417_v60 = vld [vmem:[%s2288_s14 + $0xf8] sm:$0xff] }
0x22cc   :  { %1282 = vrot.lane.b32.xlu1 %v1666_v61, %s1681_s19  ;;  %v1416_v61 = vld [vmem:[%s2288_s14 + $0xf0] sm:$0xff]  ;;  %1442 = vmatpush.msrb.mxu2 %v1417_v60 }
0x22cd   :  { %v1668_v1 = vpop.eup %1667 }
0x22ce   :  { %v1263_v3 = vadd.f32 1.0, %v1668_v1  ;;  %1443 = vmatpush.msrb.mxu2 %v1416_v61  ;;  %v1414_v1 = vld [vmem:[%s2288_s14 + $0xe0] sm:$0xff] }
0x22d0   :  { %1669 = vrcp.f32 %v1263_v3  ;;  %v1275_v12 = vand.u32 2147483648, %v1263_v3  ;;  %vm1269_vm6 = vweird.f32 %v1263_v3  ;;  %v1273_v13 = vand.u32 2147483647, %v1263_v3  ;;  %1444 = vmatpush.msrb.mxu2 %v1415_v63 }
0x22d2   :  { %v1276_v37 = vor.u32 1.1754944e-38, %v1275_v12  ;;  %vm1274_vm8 = vcmp.eq.f32.partialorder %v1273_v13, 8.507059e+37  ;;  %1445 = vmatpush.msrb.mxu2 %v1414_v1  ;;  %v1411_v12 = vld [vmem:[%s2288_s14 + $0xc8] sm:$0xff]  ;;  %v1410_v13 = vld [vmem:[%s2288_s14 + $0xc0] sm:$0xff] }
0x22d6   :  { %v1670_v6 = vpop.eup %1669 }
0x22d7   :  { %v1265_v8 = vmul.f32 %v1670_v6, %v1263_v3  ;;  %vm1270_vm5 = vweird.f32 %v1670_v6 }
0x22d8   :  { %vm1271_vm7 = vmor %vm1269_vm6, %vm1270_vm5 }
0x22d9   :  { %v1266_v9 = vsub.f32 1.0, %v1265_v8  ;;  %v1413_v8 = vld [vmem:[%s2288_s14 + $0xd8] sm:$0xff] }
0x22da   :  { %1446 = vmatpush.msrb.mxu2 %v1413_v8 }
0x22db   :  { %v1267_v10 = vmul.f32 %v1670_v6, %v1266_v9 }
0x22dd   :  { %v1268_v11 = vadd.f32 %v1670_v6, %v1267_v10 }
0x22df   :  { %v1272_v5 = vsel %vm1271_vm7, %v1670_v6, %v1268_v11  ;;  %v1412_v11 = vld [vmem:[%s2288_s14 + $0xd0] sm:$0xff] }
0x22e0   :  { %v1277_v15 = vsel %vm1274_vm8, %v1276_v37, %v1272_v5  ;;  %1447 = vmatpush.msrb.mxu2 %v1412_v11 }
0x22e1   :  { %v1280_v17 = vmul.f32 %v1277_v15, %v1233_v49  ;;  %v1394_v49 = vld [vmem:[%s2288_s14 + $0x40] sm:$0xff] }
0x22e2   :  { %1448 = vmatpush.msrb.mxu2 %v1411_v12 }
0x22e4   :  { %1449 = vmatpush.msrb.mxu2 %v1410_v13 }
0x233e   :  { %v1283_v14 = vpop.permute.xlu1 %1282 }
0x233f   :  { %v1285_v16 = vmul.f32 %v1283_v14, %v1277_v15  ;;  %v1409_v14 = vld [vmem:[%s2288_s14 + $0xb8] sm:$0xff] }
0x2340   :  { %1450 = vmatpush.msrb.mxu2 %v1409_v14 }
0x2341   :  { %1287 = vrot.lane.b32.xlu0 %v1285_v16, %s1682_s0 }
0x23b3   :  { %v1288_v18 = vpop.permute.xlu0 %1287 }
0x23b4   :  { %v2117_v20 = vadd.f32 %v1288_v18, %v1280_v17 }
0x23b6   :  { %1671 = vtanh.f32 %v2117_v20 }
0x23bc   :  { %v1672_v19 = vpop.eup %1671 }
0x23bd   :  { %1293 = vrot.lane.b32.xlu2 %v1672_v19, %s1681_s19 }
0x2417   :  { %v1294_v21 = vpop.permute.xlu2 %1293 }
0x2418   :  { %v2121_v22 = vmul.f32 %v1294_v21, %v1277_v15 }
0x241a   :  { %v1297_v24 = vpack.c.bf16 %v2121_v22, %v2121_v22 }
0x241c   :  { %1299 = vrot.lane.b32.xlu1 %v1297_v24, %s1682_s0 }
0x248e   :  { %v1300_v25 = vpop.permute.xlu1 %1299 }
0x248f   :  { %1526 = vmatmul.msk.bf16.vlgmr.msra.gmra.mxu0 %vm105_vm0, %v1300_v25 }
0x250c   :  { %v1313_v27 = vpop.f32.mrf.mxu0 }
0x250d   :  { %v1314_v28 = vadd.f32 %v2046_v7, %v1313_v27  ;;  %v1407_v27 = vld [vmem:[%s2288_s14 + $0xa8] sm:$0xff] }
0x250f   :  { %1673 = vtanh.f32 %v1314_v28  ;;  %v1527_v33 = vmul.f32 -1.442695, %v1314_v28 }
0x2511   :  { %1675 = vpow2.f32 %v1527_v33 }
0x2514   :  { %v1315_v29 = vpop.f32.mrf.mxu0 }
0x2515   :  { %v1674_v30 = vpop.eup %1673 }
0x2516   :  { %1339 = vrot.lane.b32.xlu0 %v1674_v30, %s1681_s19  ;;  %v1406_v30 = vld [vmem:[%s2288_s14 + $0xa0] sm:$0xff] }
0x2517   :  { %v1676_v7 = vpop.eup %1675 }
0x2518   :  { %v1320_v34 = vadd.f32 1.0, %v1676_v7 }
0x251a   :  { %1677 = vrcp.f32 %v1320_v34  ;;  %v1332_v41 = vand.u32 2147483648, %v1320_v34  ;;  %vm1326_vm10 = vweird.f32 %v1320_v34  ;;  %v1330_v57 = vand.u32 2147483647, %v1320_v34 }
0x251c   :  { %v1333_v38 = vor.u32 1.1754944e-38, %v1332_v41  ;;  %vm1331_vm12 = vcmp.eq.f32.partialorder %v1330_v57, 8.507059e+37 }
0x251e   :  { %1539 = vrot.lane.b32.xlu0 %v1538_v32, %s1682_s0  ;;  %v1404_v32 = vld [vmem:[%s2288_s14 + $0x90] sm:$0xff] }
0x2520   :  { %v1678_v35 = vpop.eup %1677 }
0x2521   :  { %v1322_v31 = vmul.f32 %v1678_v35, %v1320_v34  ;;  %vm1327_vm9 = vweird.f32 %v1678_v35 }
0x2522   :  { %vm1328_vm11 = vmor %vm1326_vm10, %vm1327_vm9 }
0x2523   :  { %v1323_v23 = vsub.f32 1.0, %v1322_v31 }
0x2525   :  { %v1324_v39 = vmul.f32 %v1678_v35, %v1323_v23 }
0x2526   :  { %1363 = vrot.lane.b32.xlu0 %v2078_v26, %s1684_s13  ;;  %v1401_v26 = vld [vmem:[%s2288_s14 + $0x78] sm:$0xff] }
0x2527   :  { %v1325_v40 = vadd.f32 %v1678_v35, %v1324_v39  ;;  %1422 = vmatpush.msra.mxu1 %v1401_v26  ;;  %v1552_v26 = vld [vmem:[%s2289_s15] ss:$0 sm:$0xff] }
0x2529   :  { %v1329_v42 = vsel %vm1328_vm11, %v1678_v35, %v1325_v40 }
0x252a   :  { %v2154_v46 = vsel %vm1331_vm12, %v1333_v38, %v1329_v42 }
0x252b   :  { %v1337_v3 = vmul.f32 %v2154_v46, %v2117_v20  ;;  %v1408_v20 = vld [vmem:[%s2288_s14 + $0xb0] sm:$0xff] }
0x252c   :  { %1451 = vmatpush.msrb.mxu2 %v1408_v20 }
0x252e   :  { %864 = vrot.lane.b32.xlu0 %v2040_v2, %s1685_s28  ;;  %v1400_v2 = vld [vmem:[%s2288_s14 + $0x70] sm:$0xff]  ;;  %1452 = vmatpush.msrb.mxu2 %v1407_v27 }
0x252f   :  { %1423 = vmatpush.msra.mxu1 %v1400_v2 }
0x2530   :  { %1453 = vmatpush.msrb.mxu2 %v1406_v30 }
0x2531   :  { %1424 = vmatpush.msra.mxu1 %v1399_v4 }
0x2533   :  { %1425 = vmatpush.msra.mxu1 %v1398_v36 }
0x2535   :  { %1426 = vmatpush.msra.mxu1 %v1397_v44 }
0x2537   :  { %1427 = vmatpush.msra.mxu1 %v1396_v47 }
0x2539   :  { %1428 = vmatpush.msra.mxu1 %v1395_v62 }
0x253b   :  { %1429 = vmatpush.msra.mxu1 %v1394_v49 }
0x253d   :  { %1430 = vmatpush.msra.mxu1 %v1393_v50 }
0x253f   :  { %1431 = vmatpush.msra.mxu1 %v1392_v52 }
0x2541   :  { %1432 = vmatpush.msra.mxu1 %v1391_v54 }
0x2543   :  { %1433 = vmatpush.msra.mxu1 %v1390_v59 }
0x2545   :  { %1434 = vmatpush.msra.mxu1 %v1389_v43 }
0x2588   :  { %v1340_v45 = vpop.permute.xlu0 %1339 }
0x2589   :  { %v1342_v48 = vmul.f32 %v1340_v45, %v2154_v46 }
0x258b   :  { %1344 = vrot.lane.b32.xlu2 %v1342_v48, %s1682_s0 }
0x2590   :  { %v1540_v9 = vpop.permute.xlu0 %1539 }
0x2591   :  { %v1542_v5 = vunpack.i.h.bf16 %v1540_v9  ;;  %v1541_v16 = vunpack.i.l.bf16 %v1540_v9 }
0x2593   :  { %1544 = vrot.lane.b32.xlu2 %v1543_v51, %s1681_s19 }
0x2598   :  { %v1364_v19 = vpop.permute.xlu0 %1363 }
0x259b   :  { %852 = vrot.lane.b32.xlu2 %v2028_v58, %s1682_s0  ;;  %v1388_v58 = vld [vmem:[%s2288_s14 + $0x10] sm:$0xff] }
0x259c   :  { %1435 = vmatpush.msra.mxu1 %v1388_v58 }
0x259e   :  { %1436 = vmatpush.msra.mxu1 %v1387_v55 }
0x25a0   :  { %1437 = vmatpush.msra.mxu1 %v1386_v56  ;;  %v865_v39 = vpop.permute.xlu0 %864 }
0x25e5   :  { %v1345_v6 = vpop.permute.xlu2 %1344 }
0x25e6   :  { %v1347_v10 = vadd.f32 %v1345_v6, %v1337_v3 }
0x25e8   :  { %1679 = vtanh.f32 %v1347_v10 }
0x25ed   :  { %v1545_v37 = vpop.permute.xlu2 %1544 }
0x25ee   :  { %v1680_v15 = vpop.eup %1679  ;;  %v1547_v17 = vunpack.i.h.bf16 %v1545_v37  ;;  %v1546_v18 = vunpack.i.l.bf16 %v1545_v37 }
0x25ef   :  { %1350 = vrot.lane.b32.xlu1 %v1680_v15, %s1681_s19 }
0x25f0   :  { %v1378_v21 = vsel %vm105_vm0, %v1542_v5, %v1547_v17  ;;  %v1383_v24 = vsel %vm105_vm0, %v1541_v16, %v1546_v18  ;;  %vm861_vm0 = vcmask 353568  }
0x25f1   :  { %v1380_v25 = vsel %vm1379_vm13, %v1378_v21, %v1364_v19 }
0x25f2   :  { %v1382_v28 = vsel %vm1381_vm14, %v1380_v25, %v2088_v53  ;;  %v1405_v53 = vld [vmem:[%s2288_s14 + $0x98] sm:$0xff] }
0x25f3   :  { %1438 = vmatmul.f32.vlgmr.msra.gmra.mxu1 %v1382_v28  ;;  %1454 = vmatpush.msrb.mxu2 %v1405_v53 }
0x25f5   :  { %v853_v29 = vpop.permute.xlu2 %852  ;;  %1455 = vmatpush.msrb.mxu2 %v1404_v32 }
0x25f6   :  { %856 = vst.msk [vmem:[%s2287_s16] sm:$0x3] %vm855_vm15, %v853_v29 }
0x25f7   :  { %1375 = vrot.lane.b32.xlu1 %v2121_v22, %s1684_s13  ;;  %v1403_v22 = vld [vmem:[%s2288_s14 + $0x88] sm:$0xff] }
0x25f8   :  { %1456 = vmatpush.msrb.mxu2 %v1403_v22 }
0x25ff   :  { %858 = vrot.lane.b32.xlu1 %v2037_v0, %s1686_s18  ;;  %v1402_v0 = vld [vmem:[%s2288_s14 + $0x80] sm:$0xff] }
0x2600   :  { %1457 = vmatpush.msrb.mxu2 %v1402_v0 }
0x2661   :  { %v1351_v33 = vpop.permute.xlu1 %1350 }
0x2662   :  { %v1353_v7 = vmul.f32 %v1351_v33, %v2154_v46 }
0x2669   :  { %v1376_v34 = vpop.permute.xlu1 %1375 }
0x266a   :  { %v1384_v35 = vsel %vm1379_vm13, %v1383_v24, %v1376_v34 }
0x266b   :  { %v1385_v31 = vsel %vm1381_vm14, %v1384_v35, %v1353_v7 }
0x266c   :  { %1458 = vmatmul.f32.vlgmr.msrb.gmra.mxu2 %v1385_v31 }
0x2670   :  { %v1439_v2 = vpop.f32.mrf.mxu1 }
0x2671   :  { %v859_v23 = vpop.permute.xlu1 %858  ;;  %v1440_v40 = vadd.f32 %v1552_v26, %v1439_v2 }
0x2672   :  { %862 = vst.msk [vmem:[%s2287_s16] sm:$0x3] %vm861_vm0, %v859_v23 }
0x2673   :  { %868 = vst.msk [vmem:[%s2287_s16] sm:$0x3] %vm867_vm1, %v865_v39 }
0x26ef   :  { %v1459_v41 = vpop.f32.mrf.mxu2 }
0x26f0   :  { %v1460_v4 = vadd.f32 %v1459_v41, %v1440_v40 }
0x26f2   :  { %1463 = vst.msk [vmem:[%s2287_s16] sm:$0xf] %vm1462_vm2, %v1460_v4 }

</bundles_post_ra>
